<compile_context>
chip_gen: v7x
topology: tpu7x:2x2x1
jax: 0.10.0
libtpu: 0.0.40
codegen_flags: <defaults>
</compile_context>

<pallas_src>
import functools

import jax
import jax.numpy as jnp
from jax import lax
from jax.experimental import pallas as pl
from jax.experimental.pallas import tpu as pltpu


def _msa_flash_kernel(xq_ref, xkv_ref, wq_ref, wk_ref, wv_ref,
                      bq_ref, bk_ref, bv_ref, o_ref,
                      q_scr, m_scr, l_scr, acc_scr, *, n_heads, d_head):
    # xq_ref: (1, tq, d) query-tile of x;  xkv_ref: (1, tk, d) kv-tile of x
    # wq/wk/wv: (d, d) block-diagonal fused (in, out) weights (scale folded in W_q)
    # bq/bk/bv: (1, d)
    ki = pl.program_id(2)
    nk = pl.num_programs(2)
    dtype = xq_ref.dtype

    @pl.when(ki == 0)
    def _init():
        xq = xq_ref[0]                                                # (tq, d)
        q = jnp.dot(xq, wq_ref[...], preferred_element_type=jnp.float32)
        q = q + bq_ref[...].astype(jnp.float32)
        q_scr[...] = q.astype(dtype)        # cast once; 1/sqrt(dh) already folded in
        m_scr[...] = jnp.full_like(m_scr, -jnp.inf)
        l_scr[...] = jnp.zeros_like(l_scr)
        acc_scr[...] = jnp.zeros_like(acc_scr)

    # k / v projections for this kv tile: dense MXU matmuls, f32 acc, cast once.
    xkv = xkv_ref[0]                                                  # (tk, d)
    k = (jnp.dot(xkv, wk_ref[...], preferred_element_type=jnp.float32)
         + bk_ref[...].astype(jnp.float32)).astype(dtype)
    v = (jnp.dot(xkv, wv_ref[...], preferred_element_type=jnp.float32)
         + bv_ref[...].astype(jnp.float32)).astype(dtype)
    q = q_scr[...]                                                    # (tq, d)

    for h in range(n_heads):                 # static unroll over heads
        lo, hi = h * d_head, (h + 1) * d_head
        qh = q[:, lo:hi]                                              # (tq, dh)
        kh = k[:, lo:hi]                                              # (tk, dh)
        vh = v[:, lo:hi]                                              # (tk, dh)

        # scores = q @ k.T without an in-kernel transpose (contract last dims).
        s = lax.dot_general(qh, kh, (((1,), (1,)), ((), ())),
                            preferred_element_type=jnp.float32)       # (tq, tk)

        # online softmax (f32); normalization deferred until finalize.
        m_prev = m_scr[h]                                             # (tq, 1)
        m_new = jnp.maximum(m_prev, jnp.max(s, axis=-1, keepdims=True))
        alpha = jnp.exp(m_prev - m_new)
        p = jnp.exp(s - m_new)
        l_scr[h] = alpha * l_scr[h] + jnp.sum(p, axis=-1, keepdims=True)
        acc_scr[h] = alpha * acc_scr[h] + jnp.dot(
            p.astype(dtype), vh, preferred_element_type=jnp.float32)  # (tq, dh)
        m_scr[h] = m_new

    @pl.when(ki == nk - 1)
    def _finalize():
        outs = [acc_scr[h] * pl.reciprocal(l_scr[h], approx=True)
                for h in range(n_heads)]
        o_ref[0] = jnp.concatenate(outs, axis=-1).astype(o_ref.dtype)  # dense store


def _fuse_qkv_params(wq, wk, wv, bq, bk, bv, scale):
    """Block-diagonal (d, d) fused (in, out) weights per projection + (1, d) biases.

    Head h occupies rows/cols h*dh:(h+1)*dh (per-head nn.Linear(d_head, d_head)).
    The softmax scale is folded into W_q and b_q so the kernel never scales scores.
    PyTorch Linear weights are (out, in); transposed to (in, out) here.
    """
    H, dh, _ = wq.shape
    d = H * dh

    def blockdiag(w, s):
        full = jnp.zeros((d, d), dtype=w.dtype)
        for h in range(H):
            full = full.at[h * dh:(h + 1) * dh, h * dh:(h + 1) * dh].set(w[h].T * s)
        return full

    wq_f = blockdiag(wq, scale)
    wk_f = blockdiag(wk, 1.0)
    wv_f = blockdiag(wv, 1.0)
    bq_f = (bq.reshape(1, d) * scale).astype(bq.dtype)
    bk_f = bk.reshape(1, d)
    bv_f = bv.reshape(1, d)
    return wq_f, wk_f, wv_f, bq_f, bk_f, bv_f


def _pick_tile(n, target):
    """Largest tile <= target that divides n and keeps (8,128) legality."""
    if n <= target:
        return n
    for t in range(min(target, n), 7, -1):
        if n % t == 0 and t % 8 == 0:
            return t
    return n  # fall back to full extent (always legal)


def _build_call(x, wq_f, wk_f, wv_f, bq_f, bk_f, bv_f, n_heads, d_head,
                tq, tk, single_buffer_consts):
    B, N, d = x.shape
    nq, nk = N // tq, N // tk

    def const_spec(shape):
        index_map = lambda b, qi, ki: (0,) * len(shape)
        if single_buffer_consts:
            # Constant blocks: single-buffer (they never change) to save VMEM.
            return pl.BlockSpec(shape, index_map, pipeline_mode=pl.Buffered(1))
        return pl.BlockSpec(shape, index_map)

    kernel = functools.partial(_msa_flash_kernel, n_heads=n_heads, d_head=d_head)

    return pl.pallas_call(
        kernel,
        out_shape=jax.ShapeDtypeStruct((B, N, d), x.dtype),
        grid_spec=pltpu.PrefetchScalarGridSpec(
            num_scalar_prefetch=0,
            grid=(B, nq, nk),
            in_specs=[
                pl.BlockSpec((1, tq, d), lambda b, qi, ki: (b, qi, 0)),  # x (q tile)
                pl.BlockSpec((1, tk, d), lambda b, qi, ki: (b, ki, 0)),  # x (kv tile)
                const_spec((d, d)),        # W_q (scale folded)
                const_spec((d, d)),        # W_k
                const_spec((d, d)),        # W_v
                const_spec((1, d)),        # b_q (scale folded)
                const_spec((1, d)),        # b_k
                const_spec((1, d)),        # b_v
            ],
            out_specs=pl.BlockSpec((1, tq, d), lambda b, qi, ki: (b, qi, 0)),
            scratch_shapes=[
                pltpu.VMEM((tq, d), x.dtype),                    # projected q tile
                pltpu.VMEM((n_heads, tq, 1), jnp.float32),       # running max m
                pltpu.VMEM((n_heads, tq, 1), jnp.float32),       # running denom l
                pltpu.VMEM((n_heads, tq, d_head), jnp.float32),  # un-normalized acc
            ]),
        compiler_params=pltpu.CompilerParams(
            dimension_semantics=("parallel", "parallel", "arbitrary"),
            # Above all default scoped limits; headroom under v7x 64 MiB physical.
            vmem_limit_bytes=48 * 1024 * 1024),
    )(x, x, wq_f, wk_f, wv_f, bq_f, bk_f, bv_f)


def msa_forward(x, wq, wk, wv, bq, bk, bv, n_heads, *, q_tile=256, kv_tile=256):
    """x: (B, N, d); wq/wk/wv: (H, dh, dh); bq/bk/bv: (H, dh) -> (B, N, d)."""
    B, N, d = x.shape
    dh = d // n_heads
    scale = 1.0 / float(dh) ** 0.5

    wq_f, wk_f, wv_f, bq_f, bk_f, bv_f = _fuse_qkv_params(
        wq, wk, wv, bq, bk, bv, scale)

    tq = _pick_tile(N, q_tile)
    tk = _pick_tile(N, kv_tile)

    try:
        return _build_call(x, wq_f, wk_f, wv_f, bq_f, bk_f, bv_f,
                           n_heads, dh, tq, tk, single_buffer_consts=True)
    except Exception:
        # pl.Buffered(1) unsupported on this jax/libtpu: fall back to default
        # double-buffered constant blocks (costs a bit more VMEM, same results).
        return _build_call(x, wq_f, wk_f, wv_f, bq_f, bk_f, bv_f,
                           n_heads, dh, tq, tk, single_buffer_consts=False)


def msa_reference(x, wq, wk, wv, bq, bk, bv, n_heads):
    """Pure-JAX reference mirroring the PyTorch loop."""
    B, N, d = x.shape
    dh = d // n_heads
    outs = []
    for b in range(B):
        heads = []
        for h in range(n_heads):
            seq = x[b, :, h * dh:(h + 1) * dh]
            q = seq @ wq[h].T + bq[h]
            k = seq @ wk[h].T + bk[h]
            v = seq @ wv[h].T + bv[h]
            att = jax.nn.softmax(q @ k.T / (dh ** 0.5), axis=-1)
            heads.append(att @ v)
        outs.append(jnp.concatenate(heads, axis=-1))
    return jnp.stack(outs, axis=0)


if __name__ == "__main__":
    B, N, d, n_heads = 2, 16, 32, 2
    dh = d // n_heads

    key = jax.random.PRNGKey(0)
    keys = jax.random.split(key, 7)
    x = jax.random.normal(keys[0], (B, N, d), dtype=jnp.float32)
    # deterministic synthetic parameters (nn.Linear(d_head, d_head) per head)
    wq = jax.random.normal(keys[1], (n_heads, dh, dh), dtype=jnp.float32) * 0.1
    wk = jax.random.normal(keys[2], (n_heads, dh, dh), dtype=jnp.float32) * 0.1
    wv = jax.random.normal(keys[3], (n_heads, dh, dh), dtype=jnp.float32) * 0.1
    bq = jax.random.normal(keys[4], (n_heads, dh), dtype=jnp.float32) * 0.1
    bk = jax.random.normal(keys[5], (n_heads, dh), dtype=jnp.float32) * 0.1
    bv = jax.random.normal(keys[6], (n_heads, dh), dtype=jnp.float32) * 0.1

    # q_tile=kv_tile=8 on N=16 -> 2x2 q/kv tiles: exercises the online-softmax
    # accumulation across kv tiles and the query-tile grid axis.
    out = msa_forward(x, wq, wk, wv, bq, bk, bv, n_heads, q_tile=8, kv_tile=8)
    out = jax.block_until_ready(out)

    ref = msa_reference(x, wq, wk, wv, bq, bk, bv, n_heads)
    assert out.shape == (B, N, d)
    # approx=True reciprocal (EUP vrcp) loosens tolerance slightly vs exact ref.
    assert jnp.allclose(out, ref, atol=1e-2, rtol=1e-2), "mismatch vs reference"

    print("KERNEL_OK")
</pallas_src>

<mosaic_0001>
module attributes {stable_mosaic.version = 11 : i64} {
  func.func @_msa_flash_kernel(%arg0: i32, %arg1: i32, %arg2: i32, %arg3: memref<1x8x32xf32, #tpu.memory_space<vmem>>, %arg4: memref<1x8x32xf32, #tpu.memory_space<vmem>>, %arg5: memref<32x32xf32, #tpu.memory_space<vmem>>, %arg6: memref<32x32xf32, #tpu.memory_space<vmem>>, %arg7: memref<32x32xf32, #tpu.memory_space<vmem>>, %arg8: memref<1x32xf32, #tpu.memory_space<vmem>>, %arg9: memref<1x32xf32, #tpu.memory_space<vmem>>, %arg10: memref<1x32xf32, #tpu.memory_space<vmem>>, %arg11: memref<1x8x32xf32, #tpu.memory_space<vmem>>, %arg12: memref<8x32xf32, #tpu.memory_space<vmem>>, %arg13: memref<2x8x1xf32, #tpu.memory_space<vmem>>, %arg14: memref<2x8x1xf32, #tpu.memory_space<vmem>>, %arg15: memref<2x8x16xf32, #tpu.memory_space<vmem>>) attributes {dimension_semantics = [#tpu.dimension_semantics<parallel>, #tpu.dimension_semantics<parallel>, #tpu.dimension_semantics<arbitrary>], iteration_bounds = array<i64: 2, 2, 2>, scalar_prefetch = 0 : i64, scratch_operands = 4 : i64, tpu.core_type = #tpu.core_type<tc>, window_params = [{transform_indices = @transform_0, window_bounds = array<i64: 1, 8, 32>}, {transform_indices = @transform_1, window_bounds = array<i64: 1, 8, 32>}, {pipeline_mode = #tpu.pipeline_mode<synchronous>, transform_indices = @transform_2, window_bounds = array<i64: 32, 32>}, {pipeline_mode = #tpu.pipeline_mode<synchronous>, transform_indices = @transform_3, window_bounds = array<i64: 32, 32>}, {pipeline_mode = #tpu.pipeline_mode<synchronous>, transform_indices = @transform_4, window_bounds = array<i64: 32, 32>}, {pipeline_mode = #tpu.pipeline_mode<synchronous>, transform_indices = @transform_5, window_bounds = array<i64: 1, 32>}, {pipeline_mode = #tpu.pipeline_mode<synchronous>, transform_indices = @transform_6, window_bounds = array<i64: 1, 32>}, {pipeline_mode = #tpu.pipeline_mode<synchronous>, transform_indices = @transform_7, window_bounds = array<i64: 1, 32>}, {transform_indices = @transform_8, window_bounds = array<i64: 1, 8, 32>}]} {
    %c0_i32 = arith.constant 0 : i32
    %0 = arith.cmpi eq, %arg2, %c0_i32 : i32
    %1 = arith.extui %0 : i1 to i32
    %c0_i32_0 = arith.constant 0 : i32
    %2 = arith.cmpi ne, %1, %c0_i32_0 : i32
    scf.if %2 {
      %c0_58 = arith.constant 0 : index
      %c0_59 = arith.constant 0 : index
      %c0_60 = arith.constant 0 : index
      %89 = vector.load %arg3[%c0_58, %c0_59, %c0_60] : memref<1x8x32xf32, #tpu.memory_space<vmem>>, vector<1x8x32xf32>
      %90 = vector.shape_cast %89 : vector<1x8x32xf32> to vector<8x32xf32>
      %c0_61 = arith.constant 0 : index
      %c0_62 = arith.constant 0 : index
      %91 = vector.load %arg5[%c0_61, %c0_62] : memref<32x32xf32, #tpu.memory_space<vmem>>, vector<32x32xf32>
      %cst_63 = arith.constant dense<0.000000e+00> : vector<8x32xf32>
      %92 = tpu.matmul %90, %91, %cst_63 {dimension_numbers = #tpu.dot_dimension_numbers<[1], [0], [0], [1], [0, 0, 1, 1], [], []>} : vector<8x32xf32>, vector<32x32xf32>, vector<8x32xf32> -> vector<8x32xf32>
      %c0_64 = arith.constant 0 : index
      %c0_65 = arith.constant 0 : index
      %93 = vector.load %arg8[%c0_64, %c0_65] : memref<1x32xf32, #tpu.memory_space<vmem>>, vector<1x32xf32>
      %94 = vector.broadcast %93 : vector<1x32xf32> to vector<8x32xf32>
      %95 = arith.addf %92, %94 : vector<8x32xf32>
      %c0_66 = arith.constant 0 : index
      %c0_67 = arith.constant 0 : index
      %96 = vector.load %arg12[%c0_66, %c0_67] : memref<8x32xf32, #tpu.memory_space<vmem>>, vector<8x32xf32>
      tpu.vector_store %arg12[%c0_66, %c0_67], %95 {strides = array<i32>} : memref<8x32xf32, #tpu.memory_space<vmem>>, vector<8x32xf32>,
      %cst_68 = arith.constant 0xFF800000 : f32
      %97 = vector.broadcast %cst_68 : f32 to vector<2x8x1xf32>
      %c0_69 = arith.constant 0 : index
      %c0_70 = arith.constant 0 : index
      %c0_71 = arith.constant 0 : index
      %98 = vector.load %arg13[%c0_69, %c0_70, %c0_71] : memref<2x8x1xf32, #tpu.memory_space<vmem>>, vector<2x8x1xf32>
      tpu.vector_store %arg13[%c0_69, %c0_70, %c0_71], %97 {strides = array<i32>} : memref<2x8x1xf32, #tpu.memory_space<vmem>>, vector<2x8x1xf32>,
      %cst_72 = arith.constant 0.000000e+00 : f32
      %99 = vector.broadcast %cst_72 : f32 to vector<2x8x1xf32>
      %c0_73 = arith.constant 0 : index
      %c0_74 = arith.constant 0 : index
      %c0_75 = arith.constant 0 : index
      %100 = vector.load %arg14[%c0_73, %c0_74, %c0_75] : memref<2x8x1xf32, #tpu.memory_space<vmem>>, vector<2x8x1xf32>
      tpu.vector_store %arg14[%c0_73, %c0_74, %c0_75], %99 {strides = array<i32>} : memref<2x8x1xf32, #tpu.memory_space<vmem>>, vector<2x8x1xf32>,
      %cst_76 = arith.constant 0.000000e+00 : f32
      %101 = vector.broadcast %cst_76 : f32 to vector<2x8x16xf32>
      %c0_77 = arith.constant 0 : index
      %c0_78 = arith.constant 0 : index
      %c0_79 = arith.constant 0 : index
      %102 = vector.load %arg15[%c0_77, %c0_78, %c0_79] : memref<2x8x16xf32, #tpu.memory_space<vmem>>, vector<2x8x16xf32>
      tpu.vector_store %arg15[%c0_77, %c0_78, %c0_79], %101 {strides = array<i32>} : memref<2x8x16xf32, #tpu.memory_space<vmem>>, vector<2x8x16xf32>,
    } else {
    }
    %c0 = arith.constant 0 : index
    %c0_1 = arith.constant 0 : index
    %c0_2 = arith.constant 0 : index
    %3 = vector.load %arg4[%c0, %c0_1, %c0_2] : memref<1x8x32xf32, #tpu.memory_space<vmem>>, vector<1x8x32xf32>
    %4 = vector.shape_cast %3 : vector<1x8x32xf32> to vector<8x32xf32>
    %c0_3 = arith.constant 0 : index
    %c0_4 = arith.constant 0 : index
    %5 = vector.load %arg6[%c0_3, %c0_4] : memref<32x32xf32, #tpu.memory_space<vmem>>, vector<32x32xf32>
    %cst = arith.constant dense<0.000000e+00> : vector<8x32xf32>
    %6 = tpu.matmul %4, %5, %cst {dimension_numbers = #tpu.dot_dimension_numbers<[1], [0], [0], [1], [0, 0, 1, 1], [], []>} : vector<8x32xf32>, vector<32x32xf32>, vector<8x32xf32> -> vector<8x32xf32>
    %c0_5 = arith.constant 0 : index
    %c0_6 = arith.constant 0 : index
    %7 = vector.load %arg9[%c0_5, %c0_6] : memref<1x32xf32, #tpu.memory_space<vmem>>, vector<1x32xf32>
    %8 = vector.broadcast %7 : vector<1x32xf32> to vector<8x32xf32>
    %9 = arith.addf %6, %8 : vector<8x32xf32>
    %c0_7 = arith.constant 0 : index
    %c0_8 = arith.constant 0 : index
    %10 = vector.load %arg7[%c0_7, %c0_8] : memref<32x32xf32, #tpu.memory_space<vmem>>, vector<32x32xf32>
    %cst_9 = arith.constant dense<0.000000e+00> : vector<8x32xf32>
    %11 = tpu.matmul %4, %10, %cst_9 {dimension_numbers = #tpu.dot_dimension_numbers<[1], [0], [0], [1], [0, 0, 1, 1], [], []>} : vector<8x32xf32>, vector<32x32xf32>, vector<8x32xf32> -> vector<8x32xf32>
    %c0_10 = arith.constant 0 : index
    %c0_11 = arith.constant 0 : index
    %12 = vector.load %arg10[%c0_10, %c0_11] : memref<1x32xf32, #tpu.memory_space<vmem>>, vector<1x32xf32>
    %13 = vector.broadcast %12 : vector<1x32xf32> to vector<8x32xf32>
    %14 = arith.addf %11, %13 : vector<8x32xf32>
    %c0_12 = arith.constant 0 : index
    %c0_13 = arith.constant 0 : index
    %15 = vector.load %arg12[%c0_12, %c0_13] : memref<8x32xf32, #tpu.memory_space<vmem>>, vector<8x32xf32>
    %16 = vector.extract_strided_slice %15 {offsets = [0, 0], sizes = [8, 16], strides = [1, 1]} : vector<8x32xf32> to vector<8x16xf32>
    %17 = vector.extract_strided_slice %9 {offsets = [0, 0], sizes = [8, 16], strides = [1, 1]} : vector<8x32xf32> to vector<8x16xf32>
    %18 = vector.extract_strided_slice %14 {offsets = [0, 0], sizes = [8, 16], strides = [1, 1]} : vector<8x32xf32> to vector<8x16xf32>
    %cst_14 = arith.constant dense<0.000000e+00> : vector<8x8xf32>
    %19 = tpu.matmul %16, %17, %cst_14 {dimension_numbers = #tpu.dot_dimension_numbers<[1], [1], [0], [0], [0, 0, 1, 0], [], []>} : vector<8x16xf32>, vector<8x16xf32>, vector<8x8xf32> -> vector<8x8xf32>
    %c0_15 = arith.constant 0 : index
    %c0_16 = arith.constant 0 : index
    %c0_17 = arith.constant 0 : index
    %20 = vector.load %arg13[%c0_15, %c0_16, %c0_17] : memref<2x8x1xf32, #tpu.memory_space<vmem>>, vector<1x8x1xf32>
    %21 = vector.shape_cast %20 : vector<1x8x1xf32> to vector<8x1xf32>
    %cst_18 = arith.constant dense<0xFF800000> : vector<8xf32>
    %22 = vector.multi_reduction <maximumf>, %19, %cst_18 [1] : vector<8x8xf32> to vector<8xf32>
    %23 = vector.shape_cast %22 : vector<8xf32> to vector<8x1xf32>
    %24 = arith.maximumf %21, %23 : vector<8x1xf32>
    %25 = arith.subf %21, %24 : vector<8x1xf32>
    %26 = math.exp %25 : vector<8x1xf32>
    %27 = vector.broadcast %24 : vector<8x1xf32> to vector<8x8xf32>
    %28 = arith.subf %19, %27 : vector<8x8xf32>
    %29 = math.exp %28 : vector<8x8xf32>
    %c0_19 = arith.constant 0 : index
    %c0_20 = arith.constant 0 : index
    %c0_21 = arith.constant 0 : index
    %30 = vector.load %arg14[%c0_19, %c0_20, %c0_21] : memref<2x8x1xf32, #tpu.memory_space<vmem>>, vector<1x8x1xf32>
    %31 = vector.shape_cast %30 : vector<1x8x1xf32> to vector<8x1xf32>
    %32 = arith.mulf %26, %31 : vector<8x1xf32>
    %cst_22 = arith.constant dense<0.000000e+00> : vector<8xf32>
    %33 = vector.multi_reduction <add>, %29, %cst_22 [1] : vector<8x8xf32> to vector<8xf32>
    %34 = vector.shape_cast %33 : vector<8xf32> to vector<8x1xf32>
    %35 = arith.addf %32, %34 : vector<8x1xf32>
    %c0_23 = arith.constant 0 : index
    %c0_24 = arith.constant 0 : index
    %c0_25 = arith.constant 0 : index
    %36 = vector.load %arg14[%c0_23, %c0_24, %c0_25] : memref<2x8x1xf32, #tpu.memory_space<vmem>>, vector<1x8x1xf32>
    %37 = vector.shape_cast %36 : vector<1x8x1xf32> to vector<8x1xf32>
    %38 = vector.shape_cast %35 : vector<8x1xf32> to vector<1x8x1xf32>
    tpu.vector_store %arg14[%c0_23, %c0_24, %c0_25], %38 {strides = array<i32>} : memref<2x8x1xf32, #tpu.memory_space<vmem>>, vector<1x8x1xf32>,
    %c0_26 = arith.constant 0 : index
    %c0_27 = arith.constant 0 : index
    %c0_28 = arith.constant 0 : index
    %39 = vector.load %arg15[%c0_26, %c0_27, %c0_28] : memref<2x8x16xf32, #tpu.memory_space<vmem>>, vector<1x8x16xf32>
    %40 = vector.shape_cast %39 : vector<1x8x16xf32> to vector<8x16xf32>
    %41 = vector.broadcast %26 : vector<8x1xf32> to vector<8x16xf32>
    %42 = arith.mulf %41, %40 : vector<8x16xf32>
    %cst_29 = arith.constant dense<0.000000e+00> : vector<8x16xf32>
    %43 = tpu.matmul %29, %18, %cst_29 {dimension_numbers = #tpu.dot_dimension_numbers<[1], [0], [0], [1], [0, 0, 1, 1], [], []>} : vector<8x8xf32>, vector<8x16xf32>, vector<8x16xf32> -> vector<8x16xf32>
    %44 = arith.addf %42, %43 : vector<8x16xf32>
    %c0_30 = arith.constant 0 : index
    %c0_31 = arith.constant 0 : index
    %c0_32 = arith.constant 0 : index
    %45 = vector.load %arg15[%c0_30, %c0_31, %c0_32] : memref<2x8x16xf32, #tpu.memory_space<vmem>>, vector<1x8x16xf32>
    %46 = vector.shape_cast %45 : vector<1x8x16xf32> to vector<8x16xf32>
    %47 = vector.shape_cast %44 : vector<8x16xf32> to vector<1x8x16xf32>
    tpu.vector_store %arg15[%c0_30, %c0_31, %c0_32], %47 {strides = array<i32>} : memref<2x8x16xf32, #tpu.memory_space<vmem>>, vector<1x8x16xf32>,
    %c0_33 = arith.constant 0 : index
    %c0_34 = arith.constant 0 : index
    %c0_35 = arith.constant 0 : index
    %48 = vector.load %arg13[%c0_33, %c0_34, %c0_35] : memref<2x8x1xf32, #tpu.memory_space<vmem>>, vector<1x8x1xf32>
    %49 = vector.shape_cast %48 : vector<1x8x1xf32> to vector<8x1xf32>
    %50 = vector.shape_cast %24 : vector<8x1xf32> to vector<1x8x1xf32>
    tpu.vector_store %arg13[%c0_33, %c0_34, %c0_35], %50 {strides = array<i32>} : memref<2x8x1xf32, #tpu.memory_space<vmem>>, vector<1x8x1xf32>,
    %51 = vector.extract_strided_slice %15 {offsets = [0, 16], sizes = [8, 16], strides = [1, 1]} : vector<8x32xf32> to vector<8x16xf32>
    %52 = vector.extract_strided_slice %9 {offsets = [0, 16], sizes = [8, 16], strides = [1, 1]} : vector<8x32xf32> to vector<8x16xf32>
    %53 = vector.extract_strided_slice %14 {offsets = [0, 16], sizes = [8, 16], strides = [1, 1]} : vector<8x32xf32> to vector<8x16xf32>
    %cst_36 = arith.constant dense<0.000000e+00> : vector<8x8xf32>
    %54 = tpu.matmul %51, %52, %cst_36 {dimension_numbers = #tpu.dot_dimension_numbers<[1], [1], [0], [0], [0, 0, 1, 0], [], []>} : vector<8x16xf32>, vector<8x16xf32>, vector<8x8xf32> -> vector<8x8xf32>
    %c1 = arith.constant 1 : index
    %c0_37 = arith.constant 0 : index
    %c0_38 = arith.constant 0 : index
    %55 = vector.load %arg13[%c1, %c0_37, %c0_38] : memref<2x8x1xf32, #tpu.memory_space<vmem>>, vector<1x8x1xf32>
    %56 = vector.shape_cast %55 : vector<1x8x1xf32> to vector<8x1xf32>
    %cst_39 = arith.constant dense<0xFF800000> : vector<8xf32>
    %57 = vector.multi_reduction <maximumf>, %54, %cst_39 [1] : vector<8x8xf32> to vector<8xf32>
    %58 = vector.shape_cast %57 : vector<8xf32> to vector<8x1xf32>
    %59 = arith.maximumf %56, %58 : vector<8x1xf32>
    %60 = arith.subf %56, %59 : vector<8x1xf32>
    %61 = math.exp %60 : vector<8x1xf32>
    %62 = vector.broadcast %59 : vector<8x1xf32> to vector<8x8xf32>
    %63 = arith.subf %54, %62 : vector<8x8xf32>
    %64 = math.exp %63 : vector<8x8xf32>
    %c1_40 = arith.constant 1 : index
    %c0_41 = arith.constant 0 : index
    %c0_42 = arith.constant 0 : index
    %65 = vector.load %arg14[%c1_40, %c0_41, %c0_42] : memref<2x8x1xf32, #tpu.memory_space<vmem>>, vector<1x8x1xf32>
    %66 = vector.shape_cast %65 : vector<1x8x1xf32> to vector<8x1xf32>
    %67 = arith.mulf %61, %66 : vector<8x1xf32>
    %cst_43 = arith.constant dense<0.000000e+00> : vector<8xf32>
    %68 = vector.multi_reduction <add>, %64, %cst_43 [1] : vector<8x8xf32> to vector<8xf32>
    %69 = vector.shape_cast %68 : vector<8xf32> to vector<8x1xf32>
    %70 = arith.addf %67, %69 : vector<8x1xf32>
    %c1_44 = arith.constant 1 : index
    %c0_45 = arith.constant 0 : index
    %c0_46 = arith.constant 0 : index
    %71 = vector.load %arg14[%c1_44, %c0_45, %c0_46] : memref<2x8x1xf32, #tpu.memory_space<vmem>>, vector<1x8x1xf32>
    %72 = vector.shape_cast %71 : vector<1x8x1xf32> to vector<8x1xf32>
    %73 = vector.shape_cast %70 : vector<8x1xf32> to vector<1x8x1xf32>
    tpu.vector_store %arg14[%c1_44, %c0_45, %c0_46], %73 {strides = array<i32>} : memref<2x8x1xf32, #tpu.memory_space<vmem>>, vector<1x8x1xf32>,
    %c1_47 = arith.constant 1 : index
    %c0_48 = arith.constant 0 : index
    %c0_49 = arith.constant 0 : index
    %74 = vector.load %arg15[%c1_47, %c0_48, %c0_49] : memref<2x8x16xf32, #tpu.memory_space<vmem>>, vector<1x8x16xf32>
    %75 = vector.shape_cast %74 : vector<1x8x16xf32> to vector<8x16xf32>
    %76 = vector.broadcast %61 : vector<8x1xf32> to vector<8x16xf32>
    %77 = arith.mulf %76, %75 : vector<8x16xf32>
    %cst_50 = arith.constant dense<0.000000e+00> : vector<8x16xf32>
    %78 = tpu.matmul %64, %53, %cst_50 {dimension_numbers = #tpu.dot_dimension_numbers<[1], [0], [0], [1], [0, 0, 1, 1], [], []>} : vector<8x8xf32>, vector<8x16xf32>, vector<8x16xf32> -> vector<8x16xf32>
    %79 = arith.addf %77, %78 : vector<8x16xf32>
    %c1_51 = arith.constant 1 : index
    %c0_52 = arith.constant 0 : index
    %c0_53 = arith.constant 0 : index
    %80 = vector.load %arg15[%c1_51, %c0_52, %c0_53] : memref<2x8x16xf32, #tpu.memory_space<vmem>>, vector<1x8x16xf32>
    %81 = vector.shape_cast %80 : vector<1x8x16xf32> to vector<8x16xf32>
    %82 = vector.shape_cast %79 : vector<8x16xf32> to vector<1x8x16xf32>
    tpu.vector_store %arg15[%c1_51, %c0_52, %c0_53], %82 {strides = array<i32>} : memref<2x8x16xf32, #tpu.memory_space<vmem>>, vector<1x8x16xf32>,
    %c1_54 = arith.constant 1 : index
    %c0_55 = arith.constant 0 : index
    %c0_56 = arith.constant 0 : index
    %83 = vector.load %arg13[%c1_54, %c0_55, %c0_56] : memref<2x8x1xf32, #tpu.memory_space<vmem>>, vector<1x8x1xf32>
    %84 = vector.shape_cast %83 : vector<1x8x1xf32> to vector<8x1xf32>
    %85 = vector.shape_cast %59 : vector<8x1xf32> to vector<1x8x1xf32>
    tpu.vector_store %arg13[%c1_54, %c0_55, %c0_56], %85 {strides = array<i32>} : memref<2x8x1xf32, #tpu.memory_space<vmem>>, vector<1x8x1xf32>,
    %c1_i32 = arith.constant 1 : i32
    %86 = arith.cmpi eq, %arg2, %c1_i32 : i32
    %87 = arith.extui %86 : i1 to i32
    %c0_i32_57 = arith.constant 0 : i32
    %88 = arith.cmpi ne, %87, %c0_i32_57 : i32
    scf.if %88 {
      %c0_58 = arith.constant 0 : index
      %c0_59 = arith.constant 0 : index
      %c0_60 = arith.constant 0 : index
      %89 = vector.load %arg15[%c0_58, %c0_59, %c0_60] : memref<2x8x16xf32, #tpu.memory_space<vmem>>, vector<1x8x16xf32>
      %90 = vector.shape_cast %89 : vector<1x8x16xf32> to vector<8x16xf32>
      %c0_61 = arith.constant 0 : index
      %c0_62 = arith.constant 0 : index
      %c0_63 = arith.constant 0 : index
      %91 = vector.load %arg14[%c0_61, %c0_62, %c0_63] : memref<2x8x1xf32, #tpu.memory_space<vmem>>, vector<1x8x1xf32>
      %92 = vector.shape_cast %91 : vector<1x8x1xf32> to vector<8x1xf32>
      %93 = tpu.reciprocal %92 {approx = true} : vector<8x1xf32> -> vector<8x1xf32>
      %94 = vector.broadcast %93 : vector<8x1xf32> to vector<8x16xf32>
      %95 = arith.mulf %90, %94 : vector<8x16xf32>
      %c1_64 = arith.constant 1 : index
      %c0_65 = arith.constant 0 : index
      %c0_66 = arith.constant 0 : index
      %96 = vector.load %arg15[%c1_64, %c0_65, %c0_66] : memref<2x8x16xf32, #tpu.memory_space<vmem>>, vector<1x8x16xf32>
      %97 = vector.shape_cast %96 : vector<1x8x16xf32> to vector<8x16xf32>
      %c1_67 = arith.constant 1 : index
      %c0_68 = arith.constant 0 : index
      %c0_69 = arith.constant 0 : index
      %98 = vector.load %arg14[%c1_67, %c0_68, %c0_69] : memref<2x8x1xf32, #tpu.memory_space<vmem>>, vector<1x8x1xf32>
      %99 = vector.shape_cast %98 : vector<1x8x1xf32> to vector<8x1xf32>
      %100 = tpu.reciprocal %99 {approx = true} : vector<8x1xf32> -> vector<8x1xf32>
      %101 = vector.broadcast %100 : vector<8x1xf32> to vector<8x16xf32>
      %102 = arith.mulf %97, %101 : vector<8x16xf32>
      %103 = tpu.concatenate %95, %102 in 1 : vector<8x16xf32>, vector<8x16xf32> -> vector<8x32xf32>
      %c0_70 = arith.constant 0 : index
      %c0_71 = arith.constant 0 : index
      %c0_72 = arith.constant 0 : index
      %104 = vector.load %arg11[%c0_70, %c0_71, %c0_72] : memref<1x8x32xf32, #tpu.memory_space<vmem>>, vector<1x8x32xf32>
      %105 = vector.shape_cast %104 : vector<1x8x32xf32> to vector<8x32xf32>
      %106 = vector.shape_cast %103 : vector<8x32xf32> to vector<1x8x32xf32>
      tpu.vector_store %arg11[%c0_70, %c0_71, %c0_72], %106 {strides = array<i32>} : memref<1x8x32xf32, #tpu.memory_space<vmem>>, vector<1x8x32xf32>,
    } else {
    }
    return
  }
  func.func @transform_0(%arg0: i32, %arg1: i32, %arg2: i32) -> (i32, i32, i32) {
    %c0_i32 = arith.constant 0 : i32
    %c0_i32_0 = arith.constant 0 : i32
    return %arg0, %arg1, %c0_i32 : i32, i32, i32
  }
  func.func @transform_1(%arg0: i32, %arg1: i32, %arg2: i32) -> (i32, i32, i32) {
    %c0_i32 = arith.constant 0 : i32
    %c0_i32_0 = arith.constant 0 : i32
    return %arg0, %arg2, %c0_i32 : i32, i32, i32
  }
  func.func @transform_2(%arg0: i32, %arg1: i32, %arg2: i32) -> (i32, i32) {
    %c0_i32 = arith.constant 0 : i32
    %c0_i32_0 = arith.constant 0 : i32
    %c0_i32_1 = arith.constant 0 : i32
    return %c0_i32, %c0_i32_0 : i32, i32
  }
  func.func @transform_3(%arg0: i32, %arg1: i32, %arg2: i32) -> (i32, i32) {
    %c0_i32 = arith.constant 0 : i32
    %c0_i32_0 = arith.constant 0 : i32
    %c0_i32_1 = arith.constant 0 : i32
    return %c0_i32, %c0_i32_0 : i32, i32
  }
  func.func @transform_4(%arg0: i32, %arg1: i32, %arg2: i32) -> (i32, i32) {
    %c0_i32 = arith.constant 0 : i32
    %c0_i32_0 = arith.constant 0 : i32
    %c0_i32_1 = arith.constant 0 : i32
    return %c0_i32, %c0_i32_0 : i32, i32
  }
  func.func @transform_5(%arg0: i32, %arg1: i32, %arg2: i32) -> (i32, i32) {
    %c0_i32 = arith.constant 0 : i32
    %c0_i32_0 = arith.constant 0 : i32
    %c0_i32_1 = arith.constant 0 : i32
    return %c0_i32, %c0_i32_0 : i32, i32
  }
  func.func @transform_6(%arg0: i32, %arg1: i32, %arg2: i32) -> (i32, i32) {
    %c0_i32 = arith.constant 0 : i32
    %c0_i32_0 = arith.constant 0 : i32
    %c0_i32_1 = arith.constant 0 : i32
    return %c0_i32, %c0_i32_0 : i32, i32
  }
  func.func @transform_7(%arg0: i32, %arg1: i32, %arg2: i32) -> (i32, i32) {
    %c0_i32 = arith.constant 0 : i32
    %c0_i32_0 = arith.constant 0 : i32
    %c0_i32_1 = arith.constant 0 : i32
    return %c0_i32, %c0_i32_0 : i32, i32
  }
  func.func @transform_8(%arg0: i32, %arg1: i32, %arg2: i32) -> (i32, i32, i32) {
    %c0_i32 = arith.constant 0 : i32
    %c0_i32_0 = arith.constant 0 : i32
    return %arg0, %arg1, %c0_i32 : i32, i32, i32
  }
}

module attributes {stable_mosaic.version = 11 : i64} {
  func.func @_msa_flash_kernel(%arg0: i32, %arg1: i32, %arg2: i32, %arg3: memref<1x8x32xf32, #tpu.memory_space<vmem>>, %arg4: memref<1x8x32xf32, #tpu.memory_space<vmem>>, %arg5: memref<32x32xf32, #tpu.memory_space<vmem>>, %arg6: memref<32x32xf32, #tpu.memory_space<vmem>>, %arg7: memref<32x32xf32, #tpu.memory_space<vmem>>, %arg8: memref<1x32xf32, #tpu.memory_space<vmem>>, %arg9: memref<1x32xf32, #tpu.memory_space<vmem>>, %arg10: memref<1x32xf32, #tpu.memory_space<vmem>>, %arg11: memref<1x8x32xf32, #tpu.memory_space<vmem>>, %arg12: memref<8x32xf32, #tpu.memory_space<vmem>>, %arg13: memref<2x8x1xf32, #tpu.memory_space<vmem>>, %arg14: memref<2x8x1xf32, #tpu.memory_space<vmem>>, %arg15: memref<2x8x16xf32, #tpu.memory_space<vmem>>) attributes {dimension_semantics = [#tpu.dimension_semantics<parallel>, #tpu.dimension_semantics<parallel>, #tpu.dimension_semantics<arbitrary>], iteration_bounds = array<i64: 2, 2, 2>, scalar_prefetch = 0 : i64, scratch_operands = 4 : i64, tpu.core_type = #tpu.core_type<tc>, window_params = [{transform_indices = @transform_0, window_bounds = array<i64: 1, 8, 32>}, {transform_indices = @transform_1, window_bounds = array<i64: 1, 8, 32>}, {pipeline_mode = #tpu.pipeline_mode<synchronous>, transform_indices = @transform_2, window_bounds = array<i64: 32, 32>}, {pipeline_mode = #tpu.pipeline_mode<synchronous>, transform_indices = @transform_3, window_bounds = array<i64: 32, 32>}, {pipeline_mode = #tpu.pipeline_mode<synchronous>, transform_indices = @transform_4, window_bounds = array<i64: 32, 32>}, {pipeline_mode = #tpu.pipeline_mode<synchronous>, transform_indices = @transform_5, window_bounds = array<i64: 1, 32>}, {pipeline_mode = #tpu.pipeline_mode<synchronous>, transform_indices = @transform_6, window_bounds = array<i64: 1, 32>}, {pipeline_mode = #tpu.pipeline_mode<synchronous>, transform_indices = @transform_7, window_bounds = array<i64: 1, 32>}, {transform_indices = @transform_8, window_bounds = array<i64: 1, 8, 32>}]} {
    %c0_i32 = arith.constant 0 : i32
    %0 = arith.cmpi eq, %arg2, %c0_i32 : i32
    %1 = arith.extui %0 : i1 to i32
    %c0_i32_0 = arith.constant 0 : i32
    %2 = arith.cmpi ne, %1, %c0_i32_0 : i32
    scf.if %2 {
      %c0_58 = arith.constant 0 : index
      %c0_59 = arith.constant 0 : index
      %c0_60 = arith.constant 0 : index
      %89 = vector.load %arg3[%c0_58, %c0_59, %c0_60] : memref<1x8x32xf32, #tpu.memory_space<vmem>>, vector<1x8x32xf32>
      %90 = vector.shape_cast %89 : vector<1x8x32xf32> to vector<8x32xf32>
      %c0_61 = arith.constant 0 : index
      %c0_62 = arith.constant 0 : index
      %91 = vector.load %arg5[%c0_61, %c0_62] : memref<32x32xf32, #tpu.memory_space<vmem>>, vector<32x32xf32>
      %cst_63 = arith.constant dense<0.000000e+00> : vector<8x32xf32>
      %92 = tpu.matmul %90, %91, %cst_63 {dimension_numbers = #tpu.dot_dimension_numbers<[1], [0], [0], [1], [0, 0, 1, 1], [], []>} : vector<8x32xf32>, vector<32x32xf32>, vector<8x32xf32> -> vector<8x32xf32>
      %c0_64 = arith.constant 0 : index
      %c0_65 = arith.constant 0 : index
      %93 = vector.load %arg8[%c0_64, %c0_65] : memref<1x32xf32, #tpu.memory_space<vmem>>, vector<1x32xf32>
      %94 = vector.broadcast %93 : vector<1x32xf32> to vector<8x32xf32>
      %95 = arith.addf %92, %94 : vector<8x32xf32>
      %c0_66 = arith.constant 0 : index
      %c0_67 = arith.constant 0 : index
      %96 = vector.load %arg12[%c0_66, %c0_67] : memref<8x32xf32, #tpu.memory_space<vmem>>, vector<8x32xf32>
      tpu.vector_store %arg12[%c0_66, %c0_67], %95 {strides = array<i32>} : memref<8x32xf32, #tpu.memory_space<vmem>>, vector<8x32xf32>,
      %cst_68 = arith.constant 0xFF800000 : f32
      %97 = vector.broadcast %cst_68 : f32 to vector<2x8x1xf32>
      %c0_69 = arith.constant 0 : index
      %c0_70 = arith.constant 0 : index
      %c0_71 = arith.constant 0 : index
      %98 = vector.load %arg13[%c0_69, %c0_70, %c0_71] : memref<2x8x1xf32, #tpu.memory_space<vmem>>, vector<2x8x1xf32>
      tpu.vector_store %arg13[%c0_69, %c0_70, %c0_71], %97 {strides = array<i32>} : memref<2x8x1xf32, #tpu.memory_space<vmem>>, vector<2x8x1xf32>,
      %cst_72 = arith.constant 0.000000e+00 : f32
      %99 = vector.broadcast %cst_72 : f32 to vector<2x8x1xf32>
      %c0_73 = arith.constant 0 : index
      %c0_74 = arith.constant 0 : index
      %c0_75 = arith.constant 0 : index
      %100 = vector.load %arg14[%c0_73, %c0_74, %c0_75] : memref<2x8x1xf32, #tpu.memory_space<vmem>>, vector<2x8x1xf32>
      tpu.vector_store %arg14[%c0_73, %c0_74, %c0_75], %99 {strides = array<i32>} : memref<2x8x1xf32, #tpu.memory_space<vmem>>, vector<2x8x1xf32>,
      %cst_76 = arith.constant 0.000000e+00 : f32
      %101 = vector.broadcast %cst_76 : f32 to vector<2x8x16xf32>
      %c0_77 = arith.constant 0 : index
      %c0_78 = arith.constant 0 : index
      %c0_79 = arith.constant 0 : index
      %102 = vector.load %arg15[%c0_77, %c0_78, %c0_79] : memref<2x8x16xf32, #tpu.memory_space<vmem>>, vector<2x8x16xf32>
      tpu.vector_store %arg15[%c0_77, %c0_78, %c0_79], %101 {strides = array<i32>} : memref<2x8x16xf32, #tpu.memory_space<vmem>>, vector<2x8x16xf32>,
    } else {
    }
    %c0 = arith.constant 0 : index
    %c0_1 = arith.constant 0 : index
    %c0_2 = arith.constant 0 : index
    %3 = vector.load %arg4[%c0, %c0_1, %c0_2] : memref<1x8x32xf32, #tpu.memory_space<vmem>>, vector<1x8x32xf32>
    %4 = vector.shape_cast %3 : vector<1x8x32xf32> to vector<8x32xf32>
    %c0_3 = arith.constant 0 : index
    %c0_4 = arith.constant 0 : index
    %5 = vector.load %arg6[%c0_3, %c0_4] : memref<32x32xf32, #tpu.memory_space<vmem>>, vector<32x32xf32>
    %cst = arith.constant dense<0.000000e+00> : vector<8x32xf32>
    %6 = tpu.matmul %4, %5, %cst {dimension_numbers = #tpu.dot_dimension_numbers<[1], [0], [0], [1], [0, 0, 1, 1], [], []>} : vector<8x32xf32>, vector<32x32xf32>, vector<8x32xf32> -> vector<8x32xf32>
    %c0_5 = arith.constant 0 : index
    %c0_6 = arith.constant 0 : index
    %7 = vector.load %arg9[%c0_5, %c0_6] : memref<1x32xf32, #tpu.memory_space<vmem>>, vector<1x32xf32>
    %8 = vector.broadcast %7 : vector<1x32xf32> to vector<8x32xf32>
    %9 = arith.addf %6, %8 : vector<8x32xf32>
    %c0_7 = arith.constant 0 : index
    %c0_8 = arith.constant 0 : index
    %10 = vector.load %arg7[%c0_7, %c0_8] : memref<32x32xf32, #tpu.memory_space<vmem>>, vector<32x32xf32>
    %cst_9 = arith.constant dense<0.000000e+00> : vector<8x32xf32>
    %11 = tpu.matmul %4, %10, %cst_9 {dimension_numbers = #tpu.dot_dimension_numbers<[1], [0], [0], [1], [0, 0, 1, 1], [], []>} : vector<8x32xf32>, vector<32x32xf32>, vector<8x32xf32> -> vector<8x32xf32>
    %c0_10 = arith.constant 0 : index
    %c0_11 = arith.constant 0 : index
    %12 = vector.load %arg10[%c0_10, %c0_11] : memref<1x32xf32, #tpu.memory_space<vmem>>, vector<1x32xf32>
    %13 = vector.broadcast %12 : vector<1x32xf32> to vector<8x32xf32>
    %14 = arith.addf %11, %13 : vector<8x32xf32>
    %c0_12 = arith.constant 0 : index
    %c0_13 = arith.constant 0 : index
    %15 = vector.load %arg12[%c0_12, %c0_13] : memref<8x32xf32, #tpu.memory_space<vmem>>, vector<8x32xf32>
    %16 = vector.extract_strided_slice %15 {offsets = [0, 0], sizes = [8, 16], strides = [1, 1]} : vector<8x32xf32> to vector<8x16xf32>
    %17 = vector.extract_strided_slice %9 {offsets = [0, 0], sizes = [8, 16], strides = [1, 1]} : vector<8x32xf32> to vector<8x16xf32>
    %18 = vector.extract_strided_slice %14 {offsets = [0, 0], sizes = [8, 16], strides = [1, 1]} : vector<8x32xf32> to vector<8x16xf32>
    %cst_14 = arith.constant dense<0.000000e+00> : vector<8x8xf32>
    %19 = tpu.matmul %16, %17, %cst_14 {dimension_numbers = #tpu.dot_dimension_numbers<[1], [1], [0], [0], [0, 0, 1, 0], [], []>} : vector<8x16xf32>, vector<8x16xf32>, vector<8x8xf32> -> vector<8x8xf32>
    %c0_15 = arith.constant 0 : index
    %c0_16 = arith.constant 0 : index
    %c0_17 = arith.constant 0 : index
    %20 = vector.load %arg13[%c0_15, %c0_16, %c0_17] : memref<2x8x1xf32, #tpu.memory_space<vmem>>, vector<1x8x1xf32>
    %21 = vector.shape_cast %20 : vector<1x8x1xf32> to vector<8x1xf32>
    %cst_18 = arith.constant dense<0xFF800000> : vector<8xf32>
    %22 = vector.multi_reduction <maximumf>, %19, %cst_18 [1] : vector<8x8xf32> to vector<8xf32>
    %23 = vector.shape_cast %22 : vector<8xf32> to vector<8x1xf32>
    %24 = arith.maximumf %21, %23 : vector<8x1xf32>
    %25 = arith.subf %21, %24 : vector<8x1xf32>
    %26 = math.exp %25 : vector<8x1xf32>
    %27 = vector.broadcast %24 : vector<8x1xf32> to vector<8x8xf32>
    %28 = arith.subf %19, %27 : vector<8x8xf32>
    %29 = math.exp %28 : vector<8x8xf32>
    %c0_19 = arith.constant 0 : index
    %c0_20 = arith.constant 0 : index
    %c0_21 = arith.constant 0 : index
    %30 = vector.load %arg14[%c0_19, %c0_20, %c0_21] : memref<2x8x1xf32, #tpu.memory_space<vmem>>, vector<1x8x1xf32>
    %31 = vector.shape_cast %30 : vector<1x8x1xf32> to vector<8x1xf32>
    %32 = arith.mulf %26, %31 : vector<8x1xf32>
    %cst_22 = arith.constant dense<0.000000e+00> : vector<8xf32>
    %33 = vector.multi_reduction <add>, %29, %cst_22 [1] : vector<8x8xf32> to vector<8xf32>
    %34 = vector.shape_cast %33 : vector<8xf32> to vector<8x1xf32>
    %35 = arith.addf %32, %34 : vector<8x1xf32>
    %c0_23 = arith.constant 0 : index
    %c0_24 = arith.constant 0 : index
    %c0_25 = arith.constant 0 : index
    %36 = vector.load %arg14[%c0_23, %c0_24, %c0_25] : memref<2x8x1xf32, #tpu.memory_space<vmem>>, vector<1x8x1xf32>
    %37 = vector.shape_cast %36 : vector<1x8x1xf32> to vector<8x1xf32>
    %38 = vector.shape_cast %35 : vector<8x1xf32> to vector<1x8x1xf32>
    tpu.vector_store %arg14[%c0_23, %c0_24, %c0_25], %38 {strides = array<i32>} : memref<2x8x1xf32, #tpu.memory_space<vmem>>, vector<1x8x1xf32>,
    %c0_26 = arith.constant 0 : index
    %c0_27 = arith.constant 0 : index
    %c0_28 = arith.constant 0 : index
    %39 = vector.load %arg15[%c0_26, %c0_27, %c0_28] : memref<2x8x16xf32, #tpu.memory_space<vmem>>, vector<1x8x16xf32>
    %40 = vector.shape_cast %39 : vector<1x8x16xf32> to vector<8x16xf32>
    %41 = vector.broadcast %26 : vector<8x1xf32> to vector<8x16xf32>
    %42 = arith.mulf %41, %40 : vector<8x16xf32>
    %cst_29 = arith.constant dense<0.000000e+00> : vector<8x16xf32>
    %43 = tpu.matmul %29, %18, %cst_29 {dimension_numbers = #tpu.dot_dimension_numbers<[1], [0], [0], [1], [0, 0, 1, 1], [], []>} : vector<8x8xf32>, vector<8x16xf32>, vector<8x16xf32> -> vector<8x16xf32>
    %44 = arith.addf %42, %43 : vector<8x16xf32>
    %c0_30 = arith.constant 0 : index
    %c0_31 = arith.constant 0 : index
    %c0_32 = arith.constant 0 : index
    %45 = vector.load %arg15[%c0_30, %c0_31, %c0_32] : memref<2x8x16xf32, #tpu.memory_space<vmem>>, vector<1x8x16xf32>
    %46 = vector.shape_cast %45 : vector<1x8x16xf32> to vector<8x16xf32>
    %47 = vector.shape_cast %44 : vector<8x16xf32> to vector<1x8x16xf32>
    tpu.vector_store %arg15[%c0_30, %c0_31, %c0_32], %47 {strides = array<i32>} : memref<2x8x16xf32, #tpu.memory_space<vmem>>, vector<1x8x16xf32>,
    %c0_33 = arith.constant 0 : index
    %c0_34 = arith.constant 0 : index
    %c0_35 = arith.constant 0 : index
    %48 = vector.load %arg13[%c0_33, %c0_34, %c0_35] : memref<2x8x1xf32, #tpu.memory_space<vmem>>, vector<1x8x1xf32>
    %49 = vector.shape_cast %48 : vector<1x8x1xf32> to vector<8x1xf32>
    %50 = vector.shape_cast %24 : vector<8x1xf32> to vector<1x8x1xf32>
    tpu.vector_store %arg13[%c0_33, %c0_34, %c0_35], %50 {strides = array<i32>} : memref<2x8x1xf32, #tpu.memory_space<vmem>>, vector<1x8x1xf32>,
    %51 = vector.extract_strided_slice %15 {offsets = [0, 16], sizes = [8, 16], strides = [1, 1]} : vector<8x32xf32> to vector<8x16xf32>
    %52 = vector.extract_strided_slice %9 {offsets = [0, 16], sizes = [8, 16], strides = [1, 1]} : vector<8x32xf32> to vector<8x16xf32>
    %53 = vector.extract_strided_slice %14 {offsets = [0, 16], sizes = [8, 16], strides = [1, 1]} : vector<8x32xf32> to vector<8x16xf32>
    %cst_36 = arith.constant dense<0.000000e+00> : vector<8x8xf32>
    %54 = tpu.matmul %51, %52, %cst_36 {dimension_numbers = #tpu.dot_dimension_numbers<[1], [1], [0], [0], [0, 0, 1, 0], [], []>} : vector<8x16xf32>, vector<8x16xf32>, vector<8x8xf32> -> vector<8x8xf32>
    %c1 = arith.constant 1 : index
    %c0_37 = arith.constant 0 : index
    %c0_38 = arith.constant 0 : index
    %55 = vector.load %arg13[%c1, %c0_37, %c0_38] : memref<2x8x1xf32, #tpu.memory_space<vmem>>, vector<1x8x1xf32>
    %56 = vector.shape_cast %55 : vector<1x8x1xf32> to vector<8x1xf32>
    %cst_39 = arith.constant dense<0xFF800000> : vector<8xf32>
    %57 = vector.multi_reduction <maximumf>, %54, %cst_39 [1] : vector<8x8xf32> to vector<8xf32>
    %58 = vector.shape_cast %57 : vector<8xf32> to vector<8x1xf32>
    %59 = arith.maximumf %56, %58 : vector<8x1xf32>
    %60 = arith.subf %56, %59 : vector<8x1xf32>
    %61 = math.exp %60 : vector<8x1xf32>
    %62 = vector.broadcast %59 : vector<8x1xf32> to vector<8x8xf32>
    %63 = arith.subf %54, %62 : vector<8x8xf32>
    %64 = math.exp %63 : vector<8x8xf32>
    %c1_40 = arith.constant 1 : index
    %c0_41 = arith.constant 0 : index
    %c0_42 = arith.constant 0 : index
    %65 = vector.load %arg14[%c1_40, %c0_41, %c0_42] : memref<2x8x1xf32, #tpu.memory_space<vmem>>, vector<1x8x1xf32>
    %66 = vector.shape_cast %65 : vector<1x8x1xf32> to vector<8x1xf32>
    %67 = arith.mulf %61, %66 : vector<8x1xf32>
    %cst_43 = arith.constant dense<0.000000e+00> : vector<8xf32>
    %68 = vector.multi_reduction <add>, %64, %cst_43 [1] : vector<8x8xf32> to vector<8xf32>
    %69 = vector.shape_cast %68 : vector<8xf32> to vector<8x1xf32>
    %70 = arith.addf %67, %69 : vector<8x1xf32>
    %c1_44 = arith.constant 1 : index
    %c0_45 = arith.constant 0 : index
    %c0_46 = arith.constant 0 : index
    %71 = vector.load %arg14[%c1_44, %c0_45, %c0_46] : memref<2x8x1xf32, #tpu.memory_space<vmem>>, vector<1x8x1xf32>
    %72 = vector.shape_cast %71 : vector<1x8x1xf32> to vector<8x1xf32>
    %73 = vector.shape_cast %70 : vector<8x1xf32> to vector<1x8x1xf32>
    tpu.vector_store %arg14[%c1_44, %c0_45, %c0_46], %73 {strides = array<i32>} : memref<2x8x1xf32, #tpu.memory_space<vmem>>, vector<1x8x1xf32>,
    %c1_47 = arith.constant 1 : index
    %c0_48 = arith.constant 0 : index
    %c0_49 = arith.constant 0 : index
    %74 = vector.load %arg15[%c1_47, %c0_48, %c0_49] : memref<2x8x16xf32, #tpu.memory_space<vmem>>, vector<1x8x16xf32>
    %75 = vector.shape_cast %74 : vector<1x8x16xf32> to vector<8x16xf32>
    %76 = vector.broadcast %61 : vector<8x1xf32> to vector<8x16xf32>
    %77 = arith.mulf %76, %75 : vector<8x16xf32>
    %cst_50 = arith.constant dense<0.000000e+00> : vector<8x16xf32>
    %78 = tpu.matmul %64, %53, %cst_50 {dimension_numbers = #tpu.dot_dimension_numbers<[1], [0], [0], [1], [0, 0, 1, 1], [], []>} : vector<8x8xf32>, vector<8x16xf32>, vector<8x16xf32> -> vector<8x16xf32>
    %79 = arith.addf %77, %78 : vector<8x16xf32>
    %c1_51 = arith.constant 1 : index
    %c0_52 = arith.constant 0 : index
    %c0_53 = arith.constant 0 : index
    %80 = vector.load %arg15[%c1_51, %c0_52, %c0_53] : memref<2x8x16xf32, #tpu.memory_space<vmem>>, vector<1x8x16xf32>
    %81 = vector.shape_cast %80 : vector<1x8x16xf32> to vector<8x16xf32>
    %82 = vector.shape_cast %79 : vector<8x16xf32> to vector<1x8x16xf32>
    tpu.vector_store %arg15[%c1_51, %c0_52, %c0_53], %82 {strides = array<i32>} : memref<2x8x16xf32, #tpu.memory_space<vmem>>, vector<1x8x16xf32>,
    %c1_54 = arith.constant 1 : index
    %c0_55 = arith.constant 0 : index
    %c0_56 = arith.constant 0 : index
    %83 = vector.load %arg13[%c1_54, %c0_55, %c0_56] : memref<2x8x1xf32, #tpu.memory_space<vmem>>, vector<1x8x1xf32>
    %84 = vector.shape_cast %83 : vector<1x8x1xf32> to vector<8x1xf32>
    %85 = vector.shape_cast %59 : vector<8x1xf32> to vector<1x8x1xf32>
    tpu.vector_store %arg13[%c1_54, %c0_55, %c0_56], %85 {strides = array<i32>} : memref<2x8x1xf32, #tpu.memory_space<vmem>>, vector<1x8x1xf32>,
    %c1_i32 = arith.constant 1 : i32
    %86 = arith.cmpi eq, %arg2, %c1_i32 : i32
    %87 = arith.extui %86 : i1 to i32
    %c0_i32_57 = arith.constant 0 : i32
    %88 = arith.cmpi ne, %87, %c0_i32_57 : i32
    scf.if %88 {
      %c0_58 = arith.constant 0 : index
      %c0_59 = arith.constant 0 : index
      %c0_60 = arith.constant 0 : index
      %89 = vector.load %arg15[%c0_58, %c0_59, %c0_60] : memref<2x8x16xf32, #tpu.memory_space<vmem>>, vector<1x8x16xf32>
      %90 = vector.shape_cast %89 : vector<1x8x16xf32> to vector<8x16xf32>
      %c0_61 = arith.constant 0 : index
      %c0_62 = arith.constant 0 : index
      %c0_63 = arith.constant 0 : index
      %91 = vector.load %arg14[%c0_61, %c0_62, %c0_63] : memref<2x8x1xf32, #tpu.memory_space<vmem>>, vector<1x8x1xf32>
      %92 = vector.shape_cast %91 : vector<1x8x1xf32> to vector<8x1xf32>
      %93 = tpu.reciprocal %92 {approx = true} : vector<8x1xf32> -> vector<8x1xf32>
      %94 = vector.broadcast %93 : vector<8x1xf32> to vector<8x16xf32>
      %95 = arith.mulf %90, %94 : vector<8x16xf32>
      %c1_64 = arith.constant 1 : index
      %c0_65 = arith.constant 0 : index
      %c0_66 = arith.constant 0 : index
      %96 = vector.load %arg15[%c1_64, %c0_65, %c0_66] : memref<2x8x16xf32, #tpu.memory_space<vmem>>, vector<1x8x16xf32>
      %97 = vector.shape_cast %96 : vector<1x8x16xf32> to vector<8x16xf32>
      %c1_67 = arith.constant 1 : index
      %c0_68 = arith.constant 0 : index
      %c0_69 = arith.constant 0 : index
      %98 = vector.load %arg14[%c1_67, %c0_68, %c0_69] : memref<2x8x1xf32, #tpu.memory_space<vmem>>, vector<1x8x1xf32>
      %99 = vector.shape_cast %98 : vector<1x8x1xf32> to vector<8x1xf32>
      %100 = tpu.reciprocal %99 {approx = true} : vector<8x1xf32> -> vector<8x1xf32>
      %101 = vector.broadcast %100 : vector<8x1xf32> to vector<8x16xf32>
      %102 = arith.mulf %97, %101 : vector<8x16xf32>
      %103 = tpu.concatenate %95, %102 in 1 : vector<8x16xf32>, vector<8x16xf32> -> vector<8x32xf32>
      %c0_70 = arith.constant 0 : index
      %c0_71 = arith.constant 0 : index
      %c0_72 = arith.constant 0 : index
      %104 = vector.load %arg11[%c0_70, %c0_71, %c0_72] : memref<1x8x32xf32, #tpu.memory_space<vmem>>, vector<1x8x32xf32>
      %105 = vector.shape_cast %104 : vector<1x8x32xf32> to vector<8x32xf32>
      %106 = vector.shape_cast %103 : vector<8x32xf32> to vector<1x8x32xf32>
      tpu.vector_store %arg11[%c0_70, %c0_71, %c0_72], %106 {strides = array<i32>} : memref<1x8x32xf32, #tpu.memory_space<vmem>>, vector<1x8x32xf32>,
    } else {
    }
    return
  }
  func.func @transform_0(%arg0: i32, %arg1: i32, %arg2: i32) -> (i32, i32, i32) {
    %c0_i32 = arith.constant 0 : i32
    %c0_i32_0 = arith.constant 0 : i32
    return %arg0, %arg1, %c0_i32 : i32, i32, i32
  }
  func.func @transform_1(%arg0: i32, %arg1: i32, %arg2: i32) -> (i32, i32, i32) {
    %c0_i32 = arith.constant 0 : i32
    %c0_i32_0 = arith.constant 0 : i32
    return %arg0, %arg2, %c0_i32 : i32, i32, i32
  }
  func.func @transform_2(%arg0: i32, %arg1: i32, %arg2: i32) -> (i32, i32) {
    %c0_i32 = arith.constant 0 : i32
    %c0_i32_0 = arith.constant 0 : i32
    %c0_i32_1 = arith.constant 0 : i32
    return %c0_i32, %c0_i32_0 : i32, i32
  }
  func.func @transform_3(%arg0: i32, %arg1: i32, %arg2: i32) -> (i32, i32) {
    %c0_i32 = arith.constant 0 : i32
    %c0_i32_0 = arith.constant 0 : i32
    %c0_i32_1 = arith.constant 0 : i32
    return %c0_i32, %c0_i32_0 : i32, i32
  }
  func.func @transform_4(%arg0: i32, %arg1: i32, %arg2: i32) -> (i32, i32) {
    %c0_i32 = arith.constant 0 : i32
    %c0_i32_0 = arith.constant 0 : i32
    %c0_i32_1 = arith.constant 0 : i32
    return %c0_i32, %c0_i32_0 : i32, i32
  }
  func.func @transform_5(%arg0: i32, %arg1: i32, %arg2: i32) -> (i32, i32) {
    %c0_i32 = arith.constant 0 : i32
    %c0_i32_0 = arith.constant 0 : i32
    %c0_i32_1 = arith.constant 0 : i32
    return %c0_i32, %c0_i32_0 : i32, i32
  }
  func.func @transform_6(%arg0: i32, %arg1: i32, %arg2: i32) -> (i32, i32) {
    %c0_i32 = arith.constant 0 : i32
    %c0_i32_0 = arith.constant 0 : i32
    %c0_i32_1 = arith.constant 0 : i32
    return %c0_i32, %c0_i32_0 : i32, i32
  }
  func.func @transform_7(%arg0: i32, %arg1: i32, %arg2: i32) -> (i32, i32) {
    %c0_i32 = arith.constant 0 : i32
    %c0_i32_0 = arith.constant 0 : i32
    %c0_i32_1 = arith.constant 0 : i32
    return %c0_i32, %c0_i32_0 : i32, i32
  }
  func.func @transform_8(%arg0: i32, %arg1: i32, %arg2: i32) -> (i32, i32, i32) {
    %c0_i32 = arith.constant 0 : i32
    %c0_i32_0 = arith.constant 0 : i32
    return %arg0, %arg1, %c0_i32 : i32, i32, i32
  }
}

</mosaic_0001>

<bundles_post_ra>
// kernel: tpu_custom_call.1
= control target key start
LH: loop header
LB: loop body
LE: loop exit
PB: predicated region body
PF: predicated region fallthrough
CT: control target
= control target key end

     0   :  { %s2434_s0 = inlined_call_operand.hbm [shape: f32[2,16,32], index: 0, kind: input, shape index: {}]   ;;  %s2435_s1 = inlined_call_operand.hbm [shape: f32[2,16,32], index: 1, kind: input, shape index: {}]   ;;  %s2436_s2 = inlined_call_operand.hbm [shape: f32[32,32], index: 2, kind: input, shape index: {}]   ;;  %s2437_s3 = inlined_call_operand.hbm [shape: f32[32,32], index: 3, kind: input, shape index: {}]   ;;  %s2438_s4 = inlined_call_operand.hbm [shape: f32[32,32], index: 4, kind: input, shape index: {}]   ;;  %s2439_s5 = inlined_call_operand.vmem [shape: f32[1,32], index: 5, kind: input, shape index: {}]   ;;  %s2440_s6 = inlined_call_operand.vmem [shape: f32[1,32], index: 6, kind: input, shape index: {}]   ;;  %s2441_s7 = inlined_call_operand.vmem [shape: f32[1,32], index: 7, kind: input, shape index: {}]   ;;  %s2442_s8 = inlined_call_operand.hbm [shape: f32[2,16,32], index: 8, kind: output, shape index: {}]  }
   0x1   :  { %2458 = sst [smem:[#allocation30_spill]] %s2435_s1 }
   0x2   :  { %2459 = sst [smem:[#allocation31_spill]] %s2436_s2 }
   0x3   :  { %2460 = sst [smem:[#allocation32_spill]] %s2437_s3 }
   0x4   :  { %2461 = sst [smem:[#allocation33_spill]] %s2438_s4 }
   0x5   :  { %2462 = sst [smem:[#allocation34_spill]] %s2439_s5 }
   0x6   :  { %2463 = sst [smem:[#allocation35_spill]] %s2440_s6 }
   0x7   :  { %2464 = sst [smem:[#allocation36_spill]] %s2441_s7 }
   0x8   :  { %2465 = sst [smem:[#allocation37_spill]] %s2442_s8 }
   0x9   :  { %13 = vsyncpa [#allocation7], 0 }
   0xa   :  { %15 = vsyncpa [#allocation7 + $0x1], 0 }
   0xb   :  { %16 = vsyncpa [#allocation10], 0 }
   0xc   :  { %18 = vsyncpa [#allocation10 + $0x1], 0 }
   0xd   :  { %19 = vsyncpa [#allocation13], 0 }
   0xe   :  { %20 = vsyncpa [#allocation8], 0 }
   0xf   :  { %22 = vsyncpa [#allocation8 + $0x1], 0  ;;  %s1936_s27 = smov 0   ;;  %s1938_s28 = smov 0  }
  0x10   :  { %s1940_s29 = smov 0   ;;  %s1942_s30 = smov 0  }
  0x11   :  { %s1944_s9 = smov 0   ;;  %s1946_s10 = smov 0  }
  0x12   :  { %s1948_s11 = smov 0   ;;  %s1950_s12 = smov 0  }
  0x13   :  { %s1952_s13 = smov 0   ;;  %s1954_s14 = smov 0  }
  0x14   :  { %s1956_s15 = smov 0   ;;  %s1958_s16 = smov 0  }
  0x15   :  { %s1960_s17 = smov 0  }
  0x16 LB: > { %2466 = sst [smem:[#allocation21_spill]] %s1834_s30  ;;  %s2002_s18 = sadd.s32 4294967295, %s1870_s17   ;;  %s1870_s17 = sphi %s1960_s17, %s28_s17   ;;  %s1866_s16 = sphi %s1958_s16, %s2529_s16   ;;  %s1862_s15 = sphi %s1956_s15, %s2528_s15   ;;  %s1858_s14 = sphi %s1954_s14, %s2527_s14   ;;  %s1854_s13 = sphi %s1952_s13, %s2526_s13   ;;  %s1850_s12 = sphi %s1950_s12, %s2525_s12   ;;  %s1846_s11 = sphi %s1948_s11, %s2524_s11   ;;  %s1842_s10 = sphi %s1946_s10, %s2523_s10   ;;  %s1838_s9 = sphi %s1944_s9, %s2522_s9   ;;  %s1834_s30 = sphi %s1942_s30, %s2521_s30   ;;  %s1830_s29 = sphi %s1940_s29, %s2520_s29   ;;  %s1826_s28 = sphi %s1938_s28, %s2519_s28   ;;  %s1822_s27 = sphi %s1936_s27, %s2518_s27  }
  0x17   : > { %2467 = sst [smem:[#allocation22_spill]] %s1846_s11  ;;  %p1263_p0 = scmp.ge.s32.totalorder %s1870_s17, 1 }
  0x18   : > { %2468 = sst [smem:[#allocation23_spill]] %s1850_s12  ;;  %p2446_p1 = scmp.eq.s32.totalorder %s2002_s18, 0 }
  0x19   : > { %2469 = sst [smem:[#allocation24_spill]] %s1854_s13  ;;  %p262_p2 = scmp.lt.s32.totalorder %s1870_s17, 9 }
  0x1a   : > { %s1872_s20 = smov [#allocation11]   ;;  %s1873_s23 = smov [#allocation12]  }
  0x1b   : > { %p2007_p3 = pnand %p1263_p0, %p262_p2  ;;  %s274_s21 = sshll.u32 %s1872_s20, 4  ;;  %s2011_s21 = int_to_ptr.vmem [resolvable:$true] %s274_s21 }
  0x1c   : > { %s287_s24 = sshll.u32 %s1873_s23, 4  ;;  %s1874_s25 = smov [#allocation14]   ;;  %s2021_s24 = int_to_ptr.vmem [resolvable:$true] %s287_s24 }
  0x1d   : > { %s2470_s19 = scalar_select %p2007_p3, 1, 0 }
  0x1e   : > { %p1412_p4 = pneg %p2007_p3  ;;  %s2023_s26 = sshll.u32 %s1874_s25, 4  ;;  %s301_s26 = int_to_ptr.vmem [resolvable:$true] %s2023_s26 }
  0x1f   : > { %2471 = sst [smem:[#allocation25_spill]] %s2470_s19  ;;  %s2473_s2 = sld [smem:[#allocation31_spill]] }
  0x20   : > { %p2017_p5 = pnand %p1412_p4, %p2446_p1 }
  0x22   : > { %p2033_p7 = pneg %p2017_p5 }
  0x25   : > { %s1576_s20 = scalar_lea.hbm %s2473_s2, 512 }
  0x26   : > { %p1577_p6 = scmp.ne.s32.totalorder %s2473_s2, %s1576_s20  ;;  %p1583_p10 = scmp.lt.u32.totalorder %s1576_s20, %s2473_s2 }
  0x28   : > { %p1579_p8 = pnand %p2033_p7, %p1577_p6 }
  0x2a   : > { %p1580_p9 = pneg %p1579_p8 }
  0x2c   : > { %p1585_p11 = pnand %p1583_p10, %p1580_p9 }
  0x2e   : > { %1588 = shalt.err (!%p1585_p11)
}
  0x2f   : > { %s1589_s7 = scalar_lea.vmem %s2011_s21, 512  ;;  %p1597_p2 = scmp.lt.s32.totalorder %s2011_s21, %s2011_s21 }
  0x30   : > { %p1590_p12 = scmp.ne.s32.totalorder %s2011_s21, %s1589_s7  ;;  %p1598_p4 = scmp.lt.s32.totalorder %s1589_s7, %s1589_s7 }
  0x32   : > { %p1592_p13 = pnand %p1590_p12, %p2033_p7  ;;  %p1599_p6 = por %p1598_p4, %p1597_p2 }
  0x34   : > { %p1593_p0 = pneg %p1592_p13 }
  0x36   : > { %p1600_p8 = pnand %p1599_p6, %p1593_p0 }
  0x38   : > { %1603 = shalt.err (!%p1600_p8)
}
  0x39   : > { %s1875_s8 = smov 128   ;;  %s1876_s12 = smov 8  }
  0x3a   : > { %1415 = dma.hbm_to_vmem [thread:$0]  (!%p2017_p5), %s2473_s2, 512, %s2011_s21, [#allocation10], %s1875_s8, %s1875_s8, %s1876_s12  }
  0x3b   : > { %s2475_s3 = sld [smem:[#allocation32_spill]] }
  0x41   : > { %s1604_s7 = scalar_lea.hbm %s2475_s3, 512 }
  0x42   : > { %p1605_p9 = scmp.ne.s32.totalorder %s2475_s3, %s1604_s7  ;;  %p1611_p12 = scmp.lt.u32.totalorder %s1604_s7, %s2475_s3 }
  0x44   : > { %p1607_p10 = pnand %p1605_p9, %p2033_p7 }
  0x46   : > { %p1608_p11 = pneg %p1607_p10 }
  0x48   : > { %p1613_p13 = pnand %p1611_p12, %p1608_p11 }
  0x4a   : > { %1616 = shalt.err (!%p1613_p13)
}
  0x4b   : > { %s1617_s21 = scalar_lea.vmem %s2021_s24, 512  ;;  %p1625_p6 = scmp.lt.s32.totalorder %s2021_s24, %s2021_s24 }
  0x4c   : > { %p1618_p0 = scmp.ne.s32.totalorder %s2021_s24, %s1617_s21  ;;  %p1626_p8 = scmp.lt.s32.totalorder %s1617_s21, %s1617_s21 }
  0x4e   : > { %p1620_p2 = pnand %p1618_p0, %p2033_p7  ;;  %p1627_p9 = por %p1626_p8, %p1625_p6 }
  0x50   : > { %p1621_p4 = pneg %p1620_p2 }
  0x52   : > { %p1628_p10 = pnand %p1627_p9, %p1621_p4 }
  0x54   : > { %1631 = shalt.err (!%p1628_p10)
}
  0x55   : > { %1418 = dma.hbm_to_vmem [thread:$0]  (!%p2017_p5), %s2475_s3, 512, %s2021_s24, [#allocation13], %s1875_s8, %s1875_s8, %s1876_s12  }
  0x56   : > { %s2476_s4 = sld [smem:[#allocation33_spill]] }
  0x5c   : > { %s1632_s13 = scalar_lea.hbm %s2476_s4, 512 }
  0x5d   : > { %p1633_p11 = scmp.ne.s32.totalorder %s2476_s4, %s1632_s13  ;;  %p1639_p0 = scmp.lt.u32.totalorder %s1632_s13, %s2476_s4 }
  0x5f   : > { %p1635_p12 = pnand %p1633_p11, %p2033_p7 }
  0x61   : > { %p1636_p13 = pneg %p1635_p12 }
  0x63   : > { %p1641_p2 = pnand %p1639_p0, %p1636_p13 }
  0x65   : > { %1644 = shalt.err (!%p1641_p2)
}
  0x66   : > { %s1645_s21 = scalar_lea.vmem %s301_s26, 512  ;;  %p1653_p9 = scmp.lt.s32.totalorder %s301_s26, %s301_s26 }
  0x67   : > { %p1646_p4 = scmp.ne.s32.totalorder %s301_s26, %s1645_s21  ;;  %p1654_p10 = scmp.lt.s32.totalorder %s1645_s21, %s1645_s21 }
  0x69   : > { %p1648_p6 = pnand %p1646_p4, %p2033_p7  ;;  %p1655_p1 = por %p1654_p10, %p1653_p9 }
  0x6b   : > { %p1649_p8 = pneg %p1648_p6 }
  0x6d   : > { %p1656_p3 = pnand %p1655_p1, %p1649_p8 }
  0x6f   : > { %1659 = shalt.err (!%p1656_p3)
}
  0x70   : > { %1421 = dma.hbm_to_vmem [thread:$0]  (!%p2017_p5), %s2476_s4, 512, %s301_s26, [#allocation13], %s1875_s8, %s1875_s8, %s1876_s12  }
  0x71   : > { %s1262_s6 = sadd.s32 4294967294, %s1870_s17   ;;  %s40_s22 = sadd.s32 1, %s1858_s14 }
  0x72   : > { %s43_s5 = sadd.s32 1, %s1862_s15  ;;  %p41_p1 = scmp.ge.s32.totalorder %s40_s22, 2 }
  0x73   : > { %s47_s11 = sadd.s32 1, %s1866_s16  ;;  %s56_s19 = sadd.s32 1, %s1842_s10 }
  0x74   : > { %p63_p3 = scmp.ne.s32.totalorder %s1842_s10, %s1838_s9  ;;  %s2531_s22 = smov (%p41_p1, %s40_s22), 0 }
  0x75   : > { %2477 = sst [smem:[#allocation26_spill]] %s2531_s22  ;;  %s2533_s5 = smov (!%p41_p1, %s43_s5), %s1862_s15 }
  0x76   : > { %p2455_p5 = scmp.eq.s32.totalorder %s1870_s17, 0  ;;  %p69_p7 = scmp.ne.s32.totalorder %s1838_s9, %s1834_s30 }
  0x77   : > { %p45_p11 = scmp.ge.s32.totalorder %s2533_s5, 2  ;;  %s80_s26 = ssub.s32 %s1858_s14, %s2531_s22 }
  0x78   : > { %p2125_p12 = por %p2455_p5, %p63_p3  ;;  %p2479_p13 = scmp.eq.s32.totalorder %s2002_s18, 0 }
  0x79   : > { %s2535_s5 = smov (%p45_p11, %s2533_s5), 0  ;;  %s2537_s11 = smov (!%p45_p11, %s47_s11), %s1866_s16 }
  0x7a   : > { %p2134_p0 = por %p2479_p13, %p69_p7  ;;  %2481 = sst [smem:[#allocation27_spill]] %s2535_s5 }
  0x7b   : > { %s52_s13 = ssub.s32 %s1862_s15, %s2535_s5  ;;  %p249_p2 = scmp.eq.s32.totalorder %s2002_s18, 7 }
  0x7c   : > { %p49_p4 = scmp.ge.s32.totalorder %s2537_s11, 2  ;;  %p255_p6 = scmp.eq.s32.totalorder %s1262_s6, 7 }
  0x7d   : > { %p2147_p8 = por %p249_p2, %p63_p3  ;;  %p2454_p9 = scmp.lt.s32.totalorder %s1870_s17, 8 }
  0x7e   : > { %s2539_s11 = smov (%p49_p4, %s2537_s11), 0  ;;  %p2157_p10 = por %p255_p6, %p69_p7 }
  0x7f   : > { %s2482_s20 = scalar_select %p2147_p8, 1, 0 }
  0x80   : > { %s2484_s23 = scalar_select %p2157_p10, 1, 0 }
  0x81   : > { %2483 = sst [smem:[#allocation28_spill]] %s2482_s20  ;;  %s323_s25 = sand.u32 1, %s1842_s10  }
  0x82   : > { %2485 = sst [smem:[#allocation29_spill]] %s2484_s23  ;;  %s51_s7 = ssub.s32 %s1866_s16, %s2539_s11 }
  0x83   : > { %s53_s21 = sor.u32 %s52_s13, %s51_s7  ;;  %s2164_s24 = sor.u32 %s80_s26, %s51_s7 }
  0x84   : > { %p54_p1 = scmp.eq.s32.totalorder %s53_s21, 0  ;;  %s1268_s1 = sshll.u32 %s323_s25, 3 }
  0x85   : > { %s1269_s6 = sshll.u32 %s1866_s16, 1  ;;  %s327_s5 = scalar_lea.vmem [#allocation6], %s1268_s1 }
  0x86   : > { %s2169_s2 = scalar_select %p54_p1, %s1842_s10, %s56_s19  }
  0x87   : > { %s332_s3 = sadd.s32 %s1862_s15, %s1269_s6  ;;  %s336_s22 = sshll.u32 %s327_s5, 4  ;;  %s2177_s22 = int_to_ptr.vmem [resolvable:$true] %s336_s22 }
  0x88   : > { %s1270_s4 = sshll.u32 %s332_s3, 7  ;;  %p2183_p7 = pnand %p2454_p9, %p2125_p12 }
  0x89   : > { %s2175_s20 = scalar_lea.hbm %s2434_s0, %s1270_s4  ;;  %s2188_s3 = sadd.s32 %s1858_s14, %s1269_s6 }
  0x8a   : > { %s324_s5 = scalar_lea.sflag [#allocation7], %s323_s25  ;;  %s1660_s30 = scalar_lea.hbm %s2175_s20, 128 }
  0x8b   : > { %p1661_p11 = scmp.ne.s32.totalorder %s2175_s20, %s1660_s30  ;;  %p1662_p13 = pneg %p2183_p7 }
  0x8c   : > { %s1665_s8 = scalar_lea.hbm %s2434_s0, 512  ;;  %p1666_p12 = scmp.lt.u32.totalorder %s2175_s20, %s2434_s0 }
  0x8d   : > { %p1663_p2 = pnand %p1662_p13, %p1661_p11  ;;  %p1667_p6 = scmp.lt.u32.totalorder %s1665_s8, %s1660_s30 }
  0x8e   : > { %p1669_p9 = scmp.lt.u32.totalorder %s1660_s30, %s2175_s20 }
  0x8f   : > { %p1664_p4 = pneg %p1663_p2  ;;  %p1668_p1 = por %p1667_p6, %p1666_p12 }
  0x91   : > { %p1670_p5 = por %p1669_p9, %p1668_p1 }
  0x93   : > { %p1671_p3 = pnand %p1670_p5, %p1664_p4 }
  0x95   : > { %1674 = shalt.err (!%p1671_p3)
}
  0x96   : > { %s1675_s25 = scalar_lea.vmem %s2177_s22, 128  ;;  %s1877_s7 = smov [#allocation6]  }
  0x97   : > { %p1676_p11 = scmp.ne.s32.totalorder %s2177_s22, %s1675_s25  ;;  %s1680_s21 = sshll.u32 %s1877_s7, 4  ;;  %s1681_s21 = int_to_ptr.vmem [resolvable:$false] %s1680_s21 }
  0x98   : > { %s1682_s1 = scalar_lea.vmem %s1681_s21, 256  ;;  %p1683_p8 = scmp.lt.s32.totalorder %s2177_s22, %s1681_s21 }
  0x99   : > { %p1678_p2 = pnand %p1676_p11, %p1662_p13  ;;  %p1684_p12 = scmp.lt.s32.totalorder %s1682_s1, %s1675_s25 }
  0x9b   : > { %p1679_p10 = pneg %p1678_p2  ;;  %p1685_p6 = por %p1684_p12, %p1683_p8 }
  0x9d   : > { %p1686_p9 = pnand %p1685_p6, %p1679_p10 }
  0x9f   : > { %1689 = shalt.err (!%p1686_p9)
}
  0xa0   : > { %1425 = dma.hbm_to_vmem [thread:$0]  (!%p2183_p7), %s2175_s20, 128, %s2177_s22, %s324_s5  }
  0xa1   : > { %s84_s6 = sadd.s32 1, %s1830_s29  ;;  %p2487_p5 = scmp.eq.s32.totalorder %s2164_s24, 0 }
  0xa2   : > { %p91_p8 = scmp.ne.s32.totalorder %s1830_s29, %s1826_s28  ;;  %p97_p10 = scmp.ne.s32.totalorder %s1826_s28, %s1822_s27 }
  0xa3   : > { %s2219_s30 = scalar_select %p2487_p5, %s1830_s29, %s84_s6  }
  0xa4   : > { %s343_s19 = sand.u32 1, %s1870_s17   ;;  %s345_s4 = sand.u32 1, %s1830_s29  }
  0xa5   : > { %p2488_p3 = scmp.eq.s32.totalorder %s1870_s17, 0  ;;  %p2489_p4 = scmp.eq.s32.totalorder %s2002_s18, 0 }
  0xa6   : > { %s1271_s8 = sshll.u32 %s345_s4, 3  ;;  %s1273_s13 = sshll.u32 %s2188_s3, 7 }
  0xa7   : > { %p93_p13 = por %p91_p8, %p2488_p3  ;;  %p2231_p1 = por %p97_p10, %p2489_p4 }
  0xa8   : > { %s2491_s22 = sld [smem:[#allocation30_spill]]  ;;  %s347_s27 = scalar_lea.vmem [#allocation9], %s1271_s8 }
  0xa9   : > { %s2490_s26 = scalar_select %p2231_p1, 1, 0 }
  0xaa   : > { %s356_s24 = sshll.u32 %s347_s27, 4  ;;  %p2492_p7 = scmp.lt.s32.totalorder %s1870_s17, 8  ;;  %s2241_s24 = int_to_ptr.vmem [resolvable:$true] %s356_s24 }
  0xab   : > { %s344_s3 = scalar_lea.sflag [#allocation10], %s343_s19 }
  0xac   : > { %p2245_p11 = pnand %p2492_p7, %p93_p13 }
  0xae   : > { %s2239_s20 = scalar_lea.hbm %s2491_s22, %s1273_s13  ;;  %p1692_p12 = pneg %p2245_p11 }
  0xaf   : > { %s1690_s7 = scalar_lea.hbm %s2239_s20, 128  ;;  %s1695_s6 = scalar_lea.hbm %s2491_s22, 512 }
  0xb0   : > { %p1691_p2 = scmp.ne.s32.totalorder %s2239_s20, %s1690_s7  ;;  %p1696_p5 = scmp.lt.u32.totalorder %s2239_s20, %s2491_s22 }
  0xb1   : > { %p1697_p8 = scmp.lt.u32.totalorder %s1695_s6, %s1690_s7  ;;  %p1699_p3 = scmp.lt.u32.totalorder %s1690_s7, %s2239_s20 }
  0xb2   : > { %p1693_p6 = pnand %p1692_p12, %p1691_p2 }
  0xb3   : > { %p1698_p10 = por %p1697_p8, %p1696_p5 }
  0xb4   : > { %p1694_p9 = pneg %p1693_p6 }
  0xb5   : > { %p1700_p13 = por %p1699_p3, %p1698_p10 }
  0xb7   : > { %p1701_p4 = pnand %p1700_p13, %p1694_p9 }
  0xb9   : > { %1704 = shalt.err (!%p1701_p4)
}
  0xba   : > { %s1705_s19 = scalar_lea.vmem %s2241_s24, 128  ;;  %s1878_s13 = smov [#allocation9]  }
  0xbb   : > { %p1706_p7 = scmp.ne.s32.totalorder %s2241_s24, %s1705_s19  ;;  %s1710_s23 = sshll.u32 %s1878_s13, 4  ;;  %s1711_s23 = int_to_ptr.vmem [resolvable:$false] %s1710_s23 }
  0xbc   : > { %s1712_s25 = scalar_lea.vmem %s1711_s23, 256  ;;  %p1713_p1 = scmp.lt.s32.totalorder %s2241_s24, %s1711_s23 }
  0xbd   : > { %p1708_p2 = pnand %p1706_p7, %p1692_p12  ;;  %p1714_p5 = scmp.lt.s32.totalorder %s1712_s25, %s1705_s19 }
  0xbf   : > { %p1709_p6 = pneg %p1708_p2  ;;  %p1715_p8 = por %p1714_p5, %p1713_p1 }
  0xc1   : > { %p1716_p10 = pnand %p1715_p8, %p1709_p6 }
  0xc3   : > { %1719 = shalt.err (!%p1716_p10)
}
  0xc4   : > { %1428 = dma.hbm_to_vmem [thread:$0]  (!%p2245_p11), %s2239_s20, 128, %s2241_s24, %s344_s3  }
  0xc5   : > { %s2494_s27 = sld [smem:[#allocation25_spill]] }
  0xcb   : > { %p2495_p9 = scmp.ne.s32.totalorder %s2494_s27, 0 }
  0xcc   : > { %s2277_s7 = sand.u32 (!%p2495_p9), 1, %s1838_s9  }
  0xcd   : > { %365 = sbr.rel (%p2495_p9) target bundleno = 1739 (0x6cb), region = 52  ;;  %s1275_s21 = sshll.u32 (!%p2495_p9), %s2277_s7, 3 }
  0xce   : > { %s368_s1 = scalar_lea.sflag (!%p2495_p9), [#allocation7], %s2277_s7  ;;  %s2281_s6 = scalar_lea.vmem (!%p2495_p9), [#allocation6], %s1275_s21 }
  0xd4   : > { %1801 = dma.done.wait (%p2134_p0), %s368_s1, 128  }
  0xd5   : > { %1803 = vsyncadd (%p2134_p0), %s368_s1, 4294967168  ;;  %s376_s20 = sand.u32 1, %s2002_s18   ;;  %s378_s24 = sand.u32 1, %s1826_s28  }
  0xd6   : > { %s2289_s5 = sshll.u32 %s378_s24, 3  ;;  %s377_s3 = scalar_lea.sflag [#allocation10], %s376_s20 }
  0xd7   : > { %s380_s4 = scalar_lea.vmem [#allocation9], %s2289_s5  ;;  %p2496_p1 = scmp.ne.s32.totalorder %s2490_s26, 0 }
  0xd9   : > { %1805 = dma.done.wait (%p2496_p1), %s377_s3, 128  }
  0xda   : > { %1807 = vsyncadd (%p2496_p1), %s377_s3, 4294967168  ;;  %p2497_p11 = scmp.eq.s32.totalorder %s2002_s18, 0 }
  0xdc   : > { %1809 = dma.done.wait (%p2497_p11), [#allocation10], 512   ;;  %p2498_p0 = pmov %p2497_p11 }
  0xde   : > { %1811 = vsyncadd (%p2498_p0), [#allocation10], 4294966784  ;;  %p2499_p12 = pmov %p2498_p0 }
  0xdf   : > { %p2500_p3 = pmov %p2498_p0 }
  0xe0   : > { %1813 = dma.done.wait (%p2499_p12), [#allocation13], 1024  }
  0xe1   : > { %1815 = vsyncadd (%p2500_p3), [#allocation13], 4294966272  ;;  %s2304_s12 = scalar_lea.vmem [#allocation15], %s1275_s21  ;;  %s2501_s8 = sld [smem:[#allocation22_spill]] }
  0xe7   : > { %p1281_p13 = scmp.ne.s32.totalorder %s2501_s8, 0 }
  0xe8   : > { %v435_v0 = vld [vmem:[#allocation11] sm:$0xff] (!%p1281_p13)  ;;  %v436_v1 = vld [vmem:[#allocation11 + $0x8] sm:$0xff] (!%p1281_p13)  ;;  %v437_v2 = vld [vmem:[#allocation11 + $0x10] sm:$0xff] (!%p1281_p13)  ;;  %v1879_v3 = vmov (!%p1281_p13), 0.0|0.0   ;;  %vm1880_vm0 = vmmov (!%p1281_p13), 0   ;;  %v1881_v6 = vmov (!%p1281_p13), 0.0  }
  0xe9   : > { %433 = sbr.rel (%p1281_p13) target bundleno = 457 (0x1c9), region = 76  ;;  %1376 = vmatprep.subr.bf16.mxu0 (!%p1281_p13), %v1879_v3  ;;  %v1377_v4 = vpack.c.bf16 (!%p1281_p13), %v436_v1, %v435_v0  ;;  %v438_v5 = vld [vmem:[#allocation11 + $0x18] sm:$0xff] (!%p1281_p13)  ;;  %1331 = vmatprep.mubr.msk.f32.mxu0 (!%p1281_p13), %vm1880_vm0, %v1881_v6  ;;  %vm521_vm1 = vcmask (!%p1281_p13), 7168   ;;  %vm526_vm2 = vcmask (!%p1281_p13), 130048   ;;  %v1882_v7 = vmov (!%p1281_p13), -inf   ;;  %v434_v9 = vld [vmem:[%s2281_s6] sm:$0xff] (!%p1281_p13) }
  0xea   : > { %522 = vst.msk [vmem:[#allocation3] sm:$0xff] (!%p1281_p13), %vm521_vm1, %v1882_v7  ;;  %523 = vst.msk [vmem:[#allocation3 + $0x8] sm:$0xff] (!%p1281_p13), %vm521_vm1, %v1882_v7  ;;  %v1380_v8 = vpack.c.bf16 (!%p1281_p13), %v438_v5, %v437_v2  ;;  %vm446_vm3 = vcmask (!%p1281_p13), 261120   ;;  %s2502_s19 = sld [smem:[#allocation34_spill]] (!%p1281_p13) }
  0xeb   : > { %524 = vst.msk [vmem:[#allocation4] sm:$0xff] (!%p1281_p13), %vm521_vm1, %v1881_v6  ;;  %525 = vst.msk [vmem:[#allocation4 + $0x8] sm:$0xff] (!%p1281_p13), %vm521_vm1, %v1881_v6  ;;  %1378 = vmatpush3.bf16.msra.mxu0 (!%p1281_p13), %v1377_v4 }
  0xec   : > { %527 = vst.msk [vmem:[#allocation5] sm:$0xff] (!%p1281_p13), %vm526_vm2, %v1881_v6  ;;  %528 = vst.msk [vmem:[#allocation5 + $0x8] sm:$0xff] (!%p1281_p13), %vm526_vm2, %v1881_v6  ;;  %1379 = vmatprep.subr.bf16.mxu0 (!%p1281_p13), %v1879_v3 }
  0xef   : > { %1381 = vmatpush3.bf16.msra.mxu0 (!%p1281_p13), %v1380_v8 }
  0xf0   : > { %v1282_v10 = vld [vmem:[%s2502_s19] ss:$0 sm:$0xff] }
  0xf2   : > { %1332 = vmatmul.mubr.msk.f32.vlgmr.msra.gmra.mrb[0].mxu0 %vm446_vm3, %v434_v9 }
 0x1c5   : > { %v516_v11 = vpop.f32.mrb[0].mxu0 }
 0x1c6   : > { %v517_v12 = vadd.f32 %v1282_v10, %v516_v11  ;;  %v1333_v13 = vpop.f32.mrb[1].mxu0 }
 0x1c8   : > { %520 = vst.msk [vmem:[#allocation2] sm:$0xff] %vm446_vm3, %v517_v12 }
 0x1c9 PF: > { %v530_v14 = vld [vmem:[#allocation12] sm:$0xff]  ;;  %v531_v15 = vld [vmem:[#allocation12 + $0x8] sm:$0xff]  ;;  %v532_v16 = vld [vmem:[#allocation12 + $0x10] sm:$0xff]  ;;  %v1883_v17 = vmov 0.0|0.0   ;;  %vm1884_vm4 = vmmov 0   ;;  %v1885_v20 = vmov 0.0  }
 0x1ca   : > { %1382 = vmatprep.subr.bf16.mxu0 %v1883_v17  ;;  %v1383_v18 = vpack.c.bf16 %v531_v15, %v530_v14  ;;  %v533_v19 = vld [vmem:[#allocation12 + $0x18] sm:$0xff]  ;;  %1342 = vmatprep.mubr.msk.f32.mxu0 %vm1884_vm4, %v1885_v20  ;;  %vm541_vm5 = vcmask 261120   ;;  %s2503_s25 = sld [smem:[#allocation35_spill]]  ;;  %vm697_vm6 = vcmask 130048   ;;  %s1886_s27 = smov 112   ;;  %v615_v28 = vld [vmem:[#allocation14] sm:$0xff] }
 0x1cb   : > { %1388 = vmatprep.subr.bf16.mxu1 %v1883_v17  ;;  %1353 = vmatprep.mubr.msk.f32.mxu1 %vm1884_vm4, %v1885_v20  ;;  %v1386_v21 = vpack.c.bf16 %v533_v19, %v532_v16  ;;  %v529_v22 = vld [vmem:[%s380_s4] sm:$0xff]  ;;  %v616_v29 = vld [vmem:[#allocation14 + $0x8] sm:$0xff]  ;;  %vm775_vm7 = vcmask 64512   ;;  %v1887_v39 = vmov 0   ;;  %s2504_s6 = sld [smem:[#allocation36_spill]]  ;;  %vm797_vm8 = vcmask 7168  }
 0x1cc   : > { %1384 = vmatpush3.bf16.msra.mxu0 %v1383_v18  ;;  %v617_v30 = vld [vmem:[#allocation14 + $0x10] sm:$0xff]  ;;  %v1389_v31 = vpack.c.bf16 %v616_v29, %v615_v28  ;;  %v618_v32 = vld [vmem:[#allocation14 + $0x18] sm:$0xff]  ;;  %1561 = vset.pattern.permute.xlu0 %v1887_v39  ;;  %v791_v6 = vld [vmem:[#allocation4] sm:$0xff]  ;;  %s2505_s20 = sld [smem:[#allocation22_spill]] }
 0x1cd   : > { %1385 = vmatprep.subr.bf16.mxu0 %v1883_v17  ;;  %v1392_v33 = vpack.c.bf16 %v618_v32, %v617_v30  ;;  %1562 = vset.pattern.permute.xlu1 %v1887_v39  ;;  %v774_v47 = vld [vmem:[#allocation3] sm:$0xff]  ;;  %v961_v52 = vld [vmem:[#allocation3 + $0x8] sm:$0xff]  ;;  %v978_v16 = vld [vmem:[#allocation4 + $0x8] sm:$0xff] }
 0x1ce   : > { %1390 = vmatpush3.bf16.msra.mxu1 %v1389_v31  ;;  %v799_v10 = vld [vmem:[#allocation5] sm:$0xff] }
 0x1cf   : > { %v696_v27 = vld [vmem:[#allocation2] sm:$0xff]  ;;  %1391 = vmatprep.subr.bf16.mxu1 %v1883_v17 }
 0x1d0   : > { %1387 = vmatpush3.bf16.msra.mxu0 %v1386_v21  ;;  %v1284_v23 = vld [vmem:[%s2503_s25] ss:$0 sm:$0xff] }
 0x1d1   : > { %1356 = vmatprep.subr.mxu0 %v1885_v20  ;;  %v1286_v40 = vld [vmem:[%s2504_s6] ss:$0 sm:$0xff] }
 0x1d2   : > { %1393 = vmatpush3.bf16.msra.mxu1 %v1392_v33  ;;  %p1294_p4 = scmp.ne.s32.totalorder %s2505_s20, 1 }
 0x1d3   : > { %1343 = vmatmul.mubr.msk.f32.vlgmr.msra.gmra.mrb[0].mxu0 %vm541_vm5, %v529_v22  ;;  %1361 = vmatprep.subr.mxu1 %v1885_v20  ;;  %v1888_v28 = vmov (!%p1294_p4), 0   ;;  %s1889_s24 = smov (!%p1294_p4), 16  }
 0x1d4   : > { %1358 = vmatprep.mubr.msk.f32.mxu0 %vm1884_vm4, %v1885_v20 }
 0x1d5   : > { %1354 = vmatmul.mubr.msk.f32.vlgmr.msra.gmra.mrb[0].mxu1 %vm541_vm5, %v529_v22 }
 0x1d6   : > { %1363 = vmatprep.mubr.msk.f32.mxu1 %vm1884_vm4, %v1885_v20 }
 0x2a6   : > { %v611_v24 = vpop.f32.mrb[0].mxu0 }
 0x2a7   : > { %v612_v25 = vadd.f32 %v1284_v23, %v611_v24  ;;  %v1344_v26 = vpop.f32.mrb[1].mxu0 }
 0x2a8   : > { %v692_v41 = vpop.f32.mrb[0].mxu1 }
 0x2a9   : > { %884 = vrot.lane.b32.xlu0 %v612_v25, %s1886_s27  ;;  %1357 = vmatpush3.xpose.msk.msra.mxu0 %vm697_vm6, %v612_v25  ;;  %v693_v42 = vadd.f32 %v1286_v40, %v692_v41  ;;  %v1355_v43 = vpop.f32.mrb[1].mxu1 }
 0x2aa   : > { %1366 = vmatprep.subr.mxu0 %v1885_v20 }
 0x2ab   : > { %1362 = vmatpush3.msra.mxu1 %v693_v42 }
 0x2ac   : > { %1359 = vmatmul.mubr.msk.f32.vlgmr.msra.gmra.mrb[2].mxu0 %vm697_vm6, %v696_v27  ;;  %1371 = vmatprep.subr.mxu1 %v1885_v20 }
 0x2ad   : > { %882 = vrot.lane.b32.xlu0 %v696_v27, %s1886_s27  ;;  %1368 = vmatprep.mubr.msk.f32.mxu0 %vm1884_vm4, %v1885_v20 }
 0x31b   : > { %v885_v34 = vpop.permute.xlu0 %884 }
 0x31c   : > { %1367 = vmatpush3.xpose.msk.msra.mxu0 %vm697_vm6, %v885_v34 }
 0x31f   : > { %v883_v35 = vpop.permute.xlu0 %882 }
 0x320   : > { %1369 = vmatmul.mubr.msk.f32.vlgmr.msra.gmra.mrb[4].mxu0 %vm697_vm6, %v883_v35 }
 0x37f   : > { %v770_v36 = vpop.f32.mrb[2].mxu0 }
 0x380   : > { %v776_v37 = vsel %vm775_vm7, %v770_v36, -inf  ;;  %v1360_v38 = vpop.f32.mrb[3].mxu0 }
 0x381   : > { %777 = vmax.xlane.f32.xlu1 %v776_v37 }
 0x3f3   : > { %v956_v44 = vpop.f32.mrb[4].mxu0 }
 0x3f4   : > { %v1370_v45 = vpop.f32.mrb[5].mxu0  ;;  %v962_v46 = vsel %vm775_vm7, %v956_v44, -inf }
 0x3f5   : > { %963 = vmax.xlane.f32.xlu1 %v962_v46 }
 0x40e   : > { %v778_v48 = vpop.xlane.xlu1 %777 }
 0x40f   : > { %v779_v49 = vmax.f32 %v774_v47, %v778_v48 }
 0x411   : > { %v780_v50 = vsub.f32 %v774_v47, %v779_v49  ;;  %881 = vst.msk [vmem:[#allocation3] sm:$0xff] %vm797_vm8, %v779_v49  ;;  %785 = vperm.xlu0 %1561, %v779_v49  }
 0x413   : > { %v781_v51 = vmul.f32 1.442695, %v780_v50 }
 0x415   : > { %994 = vrot.lane.b32.xlu0 %v693_v42, %s1886_s27  ;;  %1563 = vpow2.f32 %v781_v51 }
 0x41f   : > { %v1564_v55 = vpop.eup %1563 }
 0x420   : > { %v792_v7 = vmul.f32 %v1564_v55, %v791_v6 }
 0x482   : > { %v964_v53 = vpop.xlane.xlu1 %963 }
 0x483   : > { %v965_v54 = vmax.f32 %v961_v52, %v964_v53 }
 0x485   : > { %1072 = vst.msk [vmem:[#allocation3 + $0x8] sm:$0xff] %vm797_vm8, %v965_v54  ;;  %971 = vperm.xlu1 %1562, %v965_v54   ;;  %v966_v62 = vsub.f32 %v961_v52, %v965_v54 }
 0x487   : > { %v967_v63 = vmul.f32 1.442695, %v966_v62 }
 0x489   : > { %802 = vperm.xlu1 %1562, %v1564_v55  }
 0x490   : > { %v786_v56 = vpop.permute.xlu0 %785 }
 0x491   : > { %v788_v57 = vsub.f32 %v770_v36, %v786_v56 }
 0x493   : > { %v789_v58 = vmul.f32 1.442695, %v788_v57 }
 0x494   : > { %v995_v59 = vpop.permute.xlu0 %994 }
 0x495   : > { %1565 = vpow2.f32 %v789_v58 }
 0x496   : > { %1567 = vpow2.f32 %v967_v63 }
 0x49f   : > { %v1566_v60 = vpop.eup %1565 }
 0x4a0   : > { %1364 = vmatmul.mubr.msk.f32.vlgmr.msra.gmra.mrb[2].mxu1 %vm775_vm7, %v1566_v60  ;;  %v793_v61 = vsel %vm775_vm7, %v1566_v60, 0.0  ;;  %v1568_v0 = vpop.eup %1567 }
 0x4a1   : > { %794 = vadd.xlane.f32.xlu0 %v793_v61  ;;  %1372 = vmatpush3.msra.mxu1 %v995_v59  ;;  %v979_v17 = vmul.f32 %v1568_v0, %v978_v16 }
 0x4a2   : > { %1373 = vmatprep.mubr.msk.f32.mxu1 %vm1884_vm4, %v1885_v20  ;;  %v986_v20 = vld [vmem:[#allocation5 + $0x8] sm:$0xff] }
 0x4b7   : > { %989 = vperm.xlu0 %1561, %v1568_v0  }
 0x4bb   : > { %1571 = vset.pattern.permute.xlu0 (!%p1294_p4), %v1888_v28 }
 0x504   : > { %v972_v1 = vpop.permute.xlu1 %971 }
 0x505   : > { %v974_v2 = vsub.f32 %v956_v44, %v972_v1 }
 0x507   : > { %v975_v3 = vmul.f32 1.442695, %v974_v2 }
 0x508   : > { %v803_v11 = vpop.permute.xlu1 %802 }
 0x509   : > { %1569 = vpow2.f32 %v975_v3  ;;  %v805_v12 = vmul.f32 %v803_v11, %v799_v10 }
 0x513   : > { %v1570_v4 = vpop.eup %1569 }
 0x514   : > { %1374 = vmatmul.mubr.msk.f32.vlgmr.msra.gmra.mrb[4].mxu1 %vm775_vm7, %v1570_v4  ;;  %v980_v5 = vsel %vm775_vm7, %v1570_v4, 0.0 }
 0x515   : > { %981 = vadd.xlane.f32.xlu1 %v980_v5 }
 0x52e   : > { %v795_v8 = vpop.xlane.xlu0 %794 }
 0x52f   : > { %v796_v9 = vadd.f32 %v795_v8, %v792_v7 }
 0x531   : > { %798 = vst.msk [vmem:[#allocation4] sm:$0xff] %vm797_vm8, %v796_v9 }
 0x536   : > { %v990_v21 = vpop.permute.xlu0 %989 }
 0x537   : > { %v992_v22 = vmul.f32 %v990_v21, %v986_v20 }
 0x538   : > { %v1078_v27 = vld [vmem:[#allocation4] sm:$0xff] (!%p1294_p4) }
 0x573   : > { %v875_v13 = vpop.f32.mrb[2].mxu1 }
 0x574   : > { %v879_v14 = vadd.f32 %v875_v13, %v805_v12  ;;  %v1365_v15 = vpop.f32.mrb[3].mxu1 }
 0x576   : > { %880 = vst.msk [vmem:[#allocation5] sm:$0xff] %vm697_vm6, %v879_v14 }
 0x57d   : > { %v1077_v35 = vld [vmem:[#allocation5] sm:$0xff] (!%p1294_p4) }
 0x5a2   : > { %v982_v18 = vpop.xlane.xlu1 %981 }
 0x5a3   : > { %v983_v19 = vadd.f32 %v982_v18, %v979_v17 }
 0x5a5   : > { %984 = vst.msk [vmem:[#allocation4 + $0x8] sm:$0xff] %vm797_vm8, %v983_v19 }
 0x5ac   : > { %v1087_v26 = vld [vmem:[#allocation4 + $0x8] sm:$0xff] (!%p1294_p4) }
 0x5ad   : > { %1572 = vrcp.f32 (!%p1294_p4), %v1087_v26 }
 0x5ae   : > { %1574 = vrcp.f32 (!%p1294_p4), %v1078_v27 }
 0x5b7   : > { %v1573_v29 = vpop.eup (!%p1294_p4), %1572 }
 0x5b8   : > { %1091 = vperm.xlu0 (!%p1294_p4), %1571, %v1573_v29   ;;  %v1575_v30 = vpop.eup (!%p1294_p4), %1574 }
 0x5bc   : > { %1082 = vperm.xlu0 (!%p1294_p4), %1571, %v1575_v30  }
 0x5e4   : > { %1076 = sbr.rel (%p1294_p4) target bundleno = 1711 (0x6af), region = 80 }
 0x5e7   : > { %v1066_v23 = vpop.f32.mrb[4].mxu1 }
 0x5e8   : > { %v1070_v24 = vadd.f32 %v1066_v23, %v992_v22  ;;  %v1375_v25 = vpop.f32.mrb[5].mxu1 }
 0x5ea   : > { %1071 = vst.msk [vmem:[#allocation5 + $0x8] sm:$0xff] %vm697_vm6, %v1070_v24 }
 0x5f1   : > { %v1086_v31 = vld [vmem:[#allocation5 + $0x8] sm:$0xff] }
 0x637   : > { %v1092_v32 = vpop.permute.xlu0 %1091 }
 0x638   : > { %v1094_v33 = vmul.f32 %v1092_v32, %v1086_v31 }
 0x63a   : > { %1096 = vrot.lane.b32.xlu1 %v1094_v33, %s1889_s24 }
 0x63b   : > { %v1083_v34 = vpop.permute.xlu0 %1082 }
 0x63c   : > { %v1085_v36 = vmul.f32 %v1083_v34, %v1077_v35 }
 0x6ac   : > { %v1097_v37 = vpop.permute.xlu1 %1096 }
 0x6ad   : > { %v1099_v38 = vsel %vm697_vm6, %v1085_v36, %v1097_v37 }
 0x6ae   : > { %1100 = vst.msk [vmem:[%s2304_s12] sm:$0xff] %vm541_vm5, %v1099_v38 }
 0x6af PF: > { %s2506_s5 = sld [smem:[#allocation24_spill]]  ;;  %s2507_s3 = sld [smem:[#allocation23_spill]] }
 0x6b0   : > { %s2508_s4 = sld [smem:[#allocation28_spill]]  ;;  %s1117_s26 = sshll.u32 %s2304_s12, 4  ;;  %s2363_s26 = int_to_ptr.vmem [resolvable:$true] %s1117_s26 }
 0x6b1   : > { %s2509_s25 = sld [smem:[#allocation37_spill]]  ;;  %s1102_s21 = scalar_lea.sflag [#allocation8], %s2277_s7 }
 0x6b2   : > { %s1720_s1 = scalar_lea.vmem %s2363_s26, 128  ;;  %s1890_s6 = smov [#allocation15]  }
 0x6b3   : > { %p1721_p7 = scmp.ne.s32.totalorder %s2363_s26, %s1720_s1  ;;  %s1724_s20 = sshll.u32 %s1890_s6, 4  ;;  %s1725_s20 = int_to_ptr.vmem [resolvable:$false] %s1724_s20 }
 0x6b4   : > { %s1726_s12 = scalar_lea.vmem %s1725_s20, 256  ;;  %p1727_p8 = scmp.lt.s32.totalorder %s2363_s26, %s1725_s20 }
 0x6b5   : > { %s1296_s8 = sshll.u32 %s2506_s5, 1  ;;  %p1728_p10 = scmp.lt.s32.totalorder %s1726_s12, %s1720_s1 }
 0x6b6   : > { %s1113_s18 = sadd.s32 %s2507_s3, %s1296_s8  ;;  %p2510_p2 = scmp.ne.s32.totalorder %s2508_s4, 0 }
 0x6b7   : > { %s1297_s19 = sshll.u32 %s1113_s18, 7  ;;  %p1729_p9 = por %p1728_p10, %p1727_p8 }
 0x6b8   : > { %s1115_s27 = scalar_lea.hbm %s2509_s25, %s1297_s19  ;;  %p1722_p6 = pnand %p1721_p7, %p2510_p2 }
 0x6ba   : > { %p1723_p5 = pneg %p1722_p6 }
 0x6bc   : > { %p1730_p1 = pnand %p1729_p9, %p1723_p5 }
 0x6be   : > { %1733 = shalt.err (!%p1730_p1)
}
 0x6bf   : > { %s1734_s24 = scalar_lea.hbm %s1115_s27, 128  ;;  %s1738_s3 = scalar_lea.hbm %s2509_s25, 512 }
 0x6c0   : > { %p1735_p11 = scmp.ne.s32.totalorder %s1115_s27, %s1734_s24  ;;  %p1739_p3 = scmp.lt.u32.totalorder %s1115_s27, %s2509_s25 }
 0x6c1   : > { %p1740_p13 = scmp.lt.u32.totalorder %s1738_s3, %s1734_s24  ;;  %p1742_p7 = scmp.lt.u32.totalorder %s1734_s24, %s1115_s27 }
 0x6c2   : > { %p1736_p0 = pnand %p1735_p11, %p2510_p2 }
 0x6c3   : > { %p1741_p4 = por %p1740_p13, %p1739_p3 }
 0x6c4   : > { %p1737_p12 = pneg %p1736_p0 }
 0x6c5   : > { %p1743_p6 = por %p1742_p7, %p1741_p4 }
 0x6c7   : > { %p1744_p5 = pnand %p1743_p6, %p1737_p12 }
 0x6c9   : > { %1747 = shalt.err (!%p1744_p5)
}
 0x6ca   : > { %1410 = dma.vmem_to_hbm [thread:$0]  (%p2510_p2), %s2363_s26, 128, %s1115_s27, %s1102_s21  }
 0x6cb PF: > { %s2511_s19 = sld [smem:[#allocation21_spill]]  ;;  %s2512_s13 = sld [smem:[#allocation29_spill]] }
 0x6cc   : > { %p1440_p8 = scmp.ge.s32.totalorder %s1870_s17, 2 }
 0x6d1   : > { %s1129_s23 = sand.u32 1, %s2511_s19   ;;  %p2513_p10 = scmp.ne.s32.totalorder %s2512_s13, 0 }
 0x6d2   : > { %s1130_s1 = scalar_lea.sflag [#allocation8], %s1129_s23 }
 0x6d3   : > { %p1430_p9 = pnand %p1440_p8, %p2513_p10 }
 0x6d5   : > { %1817 = dma.done.wait (!%p1430_p9), %s1130_s1, 128  }
 0x6d6   : > { %1819 = vsyncadd (!%p1430_p9), %s1130_s1, 4294967168  ;;  %s28_s17 = sadd.s32 1, %s1870_s17   ;;  %s2515_s4 = sld [smem:[#allocation26_spill]] }
 0x6d7   : > { %p2390_p1 = scmp.ge.s32.totalorder %s28_s17, 10   ;;  %s2516_s26 = sld [smem:[#allocation27_spill]] }
 0x6d8   : > { %s2517_s21 = smov %s2539_s11  ;;  %s2518_s27 = smov %s1826_s28 }
 0x6d9   : > { %s2519_s28 = smov %s1830_s29  ;;  %s2520_s29 = smov %s2219_s30 }
 0x6da   : > { %s2521_s30 = smov %s1838_s9  ;;  %s2522_s9 = smov %s1842_s10 }
 0x6db   : > { %s2523_s10 = smov %s2169_s2  ;;  %s2524_s11 = smov %s1858_s14 }
 0x6dc   : > { %s2525_s12 = smov %s1862_s15  ;;  %s2526_s13 = smov %s1866_s16 }
 0x6dd   : > { %s2527_s14 = smov %s2515_s4  ;;  %s2528_s15 = smov %s2516_s26 }
 0x6de   : > { %s2529_s16 = smov %s2517_s21  ;;  %27 = sbr.rel (!%p2390_p1) target bundleno = 22 (0x16), region = 133 }
 0x6e5   :  { %1135 = vsyncpa [#allocation7], 1 }
 0x6e6   :  { %1137 = vsyncpa [#allocation7 + $0x1], 1 }
 0x6e7   :  { %1138 = vsyncpa [#allocation10], 1 }
 0x6e8   :  { %1140 = vsyncpa [#allocation10 + $0x1], 1 }
 0x6e9   :  { %1141 = vsyncpa [#allocation13], 1 }
 0x6ea   :  { %1142 = vsyncpa [#allocation8], 1 }
 0x6eb   :  { %1144 = vsyncpa [#allocation8 + $0x1], 1 }

// kernel: tpu_custom_call.1
= control target key start
LH: loop header
LB: loop body
LE: loop exit
PB: predicated region body
PF: predicated region fallthrough
CT: control target
= control target key end

     0   :  { %s2434_s0 = inlined_call_operand.hbm [shape: f32[2,16,32], index: 0, kind: input, shape index: {}]   ;;  %s2435_s1 = inlined_call_operand.hbm [shape: f32[2,16,32], index: 1, kind: input, shape index: {}]   ;;  %s2436_s2 = inlined_call_operand.hbm [shape: f32[32,32], index: 2, kind: input, shape index: {}]   ;;  %s2437_s3 = inlined_call_operand.hbm [shape: f32[32,32], index: 3, kind: input, shape index: {}]   ;;  %s2438_s4 = inlined_call_operand.hbm [shape: f32[32,32], index: 4, kind: input, shape index: {}]   ;;  %s2439_s5 = inlined_call_operand.vmem [shape: f32[1,32], index: 5, kind: input, shape index: {}]   ;;  %s2440_s6 = inlined_call_operand.vmem [shape: f32[1,32], index: 6, kind: input, shape index: {}]   ;;  %s2441_s7 = inlined_call_operand.vmem [shape: f32[1,32], index: 7, kind: input, shape index: {}]   ;;  %s2442_s8 = inlined_call_operand.hbm [shape: f32[2,16,32], index: 8, kind: output, shape index: {}]  }
   0x1   :  { %2458 = sst [smem:[#allocation30_spill]] %s2435_s1 }
   0x2   :  { %2459 = sst [smem:[#allocation31_spill]] %s2436_s2 }
   0x3   :  { %2460 = sst [smem:[#allocation32_spill]] %s2437_s3 }
   0x4   :  { %2461 = sst [smem:[#allocation33_spill]] %s2438_s4 }
   0x5   :  { %2462 = sst [smem:[#allocation34_spill]] %s2439_s5 }
   0x6   :  { %2463 = sst [smem:[#allocation35_spill]] %s2440_s6 }
   0x7   :  { %2464 = sst [smem:[#allocation36_spill]] %s2441_s7 }
   0x8   :  { %2465 = sst [smem:[#allocation37_spill]] %s2442_s8 }
   0x9   :  { %13 = vsyncpa [#allocation7], 0 }
   0xa   :  { %15 = vsyncpa [#allocation7 + $0x1], 0 }
   0xb   :  { %16 = vsyncpa [#allocation10], 0 }
   0xc   :  { %18 = vsyncpa [#allocation10 + $0x1], 0 }
   0xd   :  { %19 = vsyncpa [#allocation13], 0 }
   0xe   :  { %20 = vsyncpa [#allocation8], 0 }
   0xf   :  { %22 = vsyncpa [#allocation8 + $0x1], 0  ;;  %s1936_s27 = smov 0   ;;  %s1938_s28 = smov 0  }
  0x10   :  { %s1940_s29 = smov 0   ;;  %s1942_s30 = smov 0  }
  0x11   :  { %s1944_s9 = smov 0   ;;  %s1946_s10 = smov 0  }
  0x12   :  { %s1948_s11 = smov 0   ;;  %s1950_s12 = smov 0  }
  0x13   :  { %s1952_s13 = smov 0   ;;  %s1954_s14 = smov 0  }
  0x14   :  { %s1956_s15 = smov 0   ;;  %s1958_s16 = smov 0  }
  0x15   :  { %s1960_s17 = smov 0  }
  0x16 LB: > { %2466 = sst [smem:[#allocation21_spill]] %s1834_s30  ;;  %s2002_s18 = sadd.s32 4294967295, %s1870_s17   ;;  %s1870_s17 = sphi %s1960_s17, %s28_s17   ;;  %s1866_s16 = sphi %s1958_s16, %s2529_s16   ;;  %s1862_s15 = sphi %s1956_s15, %s2528_s15   ;;  %s1858_s14 = sphi %s1954_s14, %s2527_s14   ;;  %s1854_s13 = sphi %s1952_s13, %s2526_s13   ;;  %s1850_s12 = sphi %s1950_s12, %s2525_s12   ;;  %s1846_s11 = sphi %s1948_s11, %s2524_s11   ;;  %s1842_s10 = sphi %s1946_s10, %s2523_s10   ;;  %s1838_s9 = sphi %s1944_s9, %s2522_s9   ;;  %s1834_s30 = sphi %s1942_s30, %s2521_s30   ;;  %s1830_s29 = sphi %s1940_s29, %s2520_s29   ;;  %s1826_s28 = sphi %s1938_s28, %s2519_s28   ;;  %s1822_s27 = sphi %s1936_s27, %s2518_s27  }
  0x17   : > { %2467 = sst [smem:[#allocation22_spill]] %s1846_s11  ;;  %p1263_p0 = scmp.ge.s32.totalorder %s1870_s17, 1 }
  0x18   : > { %2468 = sst [smem:[#allocation23_spill]] %s1850_s12  ;;  %p2446_p1 = scmp.eq.s32.totalorder %s2002_s18, 0 }
  0x19   : > { %2469 = sst [smem:[#allocation24_spill]] %s1854_s13  ;;  %p262_p2 = scmp.lt.s32.totalorder %s1870_s17, 9 }
  0x1a   : > { %s1872_s20 = smov [#allocation11]   ;;  %s1873_s23 = smov [#allocation12]  }
  0x1b   : > { %p2007_p3 = pnand %p1263_p0, %p262_p2  ;;  %s274_s21 = sshll.u32 %s1872_s20, 4  ;;  %s2011_s21 = int_to_ptr.vmem [resolvable:$true] %s274_s21 }
  0x1c   : > { %s287_s24 = sshll.u32 %s1873_s23, 4  ;;  %s1874_s25 = smov [#allocation14]   ;;  %s2021_s24 = int_to_ptr.vmem [resolvable:$true] %s287_s24 }
  0x1d   : > { %s2470_s19 = scalar_select %p2007_p3, 1, 0 }
  0x1e   : > { %p1412_p4 = pneg %p2007_p3  ;;  %s2023_s26 = sshll.u32 %s1874_s25, 4  ;;  %s301_s26 = int_to_ptr.vmem [resolvable:$true] %s2023_s26 }
  0x1f   : > { %2471 = sst [smem:[#allocation25_spill]] %s2470_s19  ;;  %s2473_s2 = sld [smem:[#allocation31_spill]] }
  0x20   : > { %p2017_p5 = pnand %p1412_p4, %p2446_p1 }
  0x22   : > { %p2033_p7 = pneg %p2017_p5 }
  0x25   : > { %s1576_s20 = scalar_lea.hbm %s2473_s2, 512 }
  0x26   : > { %p1577_p6 = scmp.ne.s32.totalorder %s2473_s2, %s1576_s20  ;;  %p1583_p10 = scmp.lt.u32.totalorder %s1576_s20, %s2473_s2 }
  0x28   : > { %p1579_p8 = pnand %p2033_p7, %p1577_p6 }
  0x2a   : > { %p1580_p9 = pneg %p1579_p8 }
  0x2c   : > { %p1585_p11 = pnand %p1583_p10, %p1580_p9 }
  0x2e   : > { %1588 = shalt.err (!%p1585_p11)
}
  0x2f   : > { %s1589_s7 = scalar_lea.vmem %s2011_s21, 512  ;;  %p1597_p2 = scmp.lt.s32.totalorder %s2011_s21, %s2011_s21 }
  0x30   : > { %p1590_p12 = scmp.ne.s32.totalorder %s2011_s21, %s1589_s7  ;;  %p1598_p4 = scmp.lt.s32.totalorder %s1589_s7, %s1589_s7 }
  0x32   : > { %p1592_p13 = pnand %p1590_p12, %p2033_p7  ;;  %p1599_p6 = por %p1598_p4, %p1597_p2 }
  0x34   : > { %p1593_p0 = pneg %p1592_p13 }
  0x36   : > { %p1600_p8 = pnand %p1599_p6, %p1593_p0 }
  0x38   : > { %1603 = shalt.err (!%p1600_p8)
}
  0x39   : > { %s1875_s8 = smov 128   ;;  %s1876_s12 = smov 8  }
  0x3a   : > { %1415 = dma.hbm_to_vmem [thread:$0]  (!%p2017_p5), %s2473_s2, 512, %s2011_s21, [#allocation10], %s1875_s8, %s1875_s8, %s1876_s12  }
  0x3b   : > { %s2475_s3 = sld [smem:[#allocation32_spill]] }
  0x41   : > { %s1604_s7 = scalar_lea.hbm %s2475_s3, 512 }
  0x42   : > { %p1605_p9 = scmp.ne.s32.totalorder %s2475_s3, %s1604_s7  ;;  %p1611_p12 = scmp.lt.u32.totalorder %s1604_s7, %s2475_s3 }
  0x44   : > { %p1607_p10 = pnand %p1605_p9, %p2033_p7 }
  0x46   : > { %p1608_p11 = pneg %p1607_p10 }
  0x48   : > { %p1613_p13 = pnand %p1611_p12, %p1608_p11 }
  0x4a   : > { %1616 = shalt.err (!%p1613_p13)
}
  0x4b   : > { %s1617_s21 = scalar_lea.vmem %s2021_s24, 512  ;;  %p1625_p6 = scmp.lt.s32.totalorder %s2021_s24, %s2021_s24 }
  0x4c   : > { %p1618_p0 = scmp.ne.s32.totalorder %s2021_s24, %s1617_s21  ;;  %p1626_p8 = scmp.lt.s32.totalorder %s1617_s21, %s1617_s21 }
  0x4e   : > { %p1620_p2 = pnand %p1618_p0, %p2033_p7  ;;  %p1627_p9 = por %p1626_p8, %p1625_p6 }
  0x50   : > { %p1621_p4 = pneg %p1620_p2 }
  0x52   : > { %p1628_p10 = pnand %p1627_p9, %p1621_p4 }
  0x54   : > { %1631 = shalt.err (!%p1628_p10)
}
  0x55   : > { %1418 = dma.hbm_to_vmem [thread:$0]  (!%p2017_p5), %s2475_s3, 512, %s2021_s24, [#allocation13], %s1875_s8, %s1875_s8, %s1876_s12  }
  0x56   : > { %s2476_s4 = sld [smem:[#allocation33_spill]] }
  0x5c   : > { %s1632_s13 = scalar_lea.hbm %s2476_s4, 512 }
  0x5d   : > { %p1633_p11 = scmp.ne.s32.totalorder %s2476_s4, %s1632_s13  ;;  %p1639_p0 = scmp.lt.u32.totalorder %s1632_s13, %s2476_s4 }
  0x5f   : > { %p1635_p12 = pnand %p1633_p11, %p2033_p7 }
  0x61   : > { %p1636_p13 = pneg %p1635_p12 }
  0x63   : > { %p1641_p2 = pnand %p1639_p0, %p1636_p13 }
  0x65   : > { %1644 = shalt.err (!%p1641_p2)
}
  0x66   : > { %s1645_s21 = scalar_lea.vmem %s301_s26, 512  ;;  %p1653_p9 = scmp.lt.s32.totalorder %s301_s26, %s301_s26 }
  0x67   : > { %p1646_p4 = scmp.ne.s32.totalorder %s301_s26, %s1645_s21  ;;  %p1654_p10 = scmp.lt.s32.totalorder %s1645_s21, %s1645_s21 }
  0x69   : > { %p1648_p6 = pnand %p1646_p4, %p2033_p7  ;;  %p1655_p1 = por %p1654_p10, %p1653_p9 }
  0x6b   : > { %p1649_p8 = pneg %p1648_p6 }
  0x6d   : > { %p1656_p3 = pnand %p1655_p1, %p1649_p8 }
  0x6f   : > { %1659 = shalt.err (!%p1656_p3)
}
  0x70   : > { %1421 = dma.hbm_to_vmem [thread:$0]  (!%p2017_p5), %s2476_s4, 512, %s301_s26, [#allocation13], %s1875_s8, %s1875_s8, %s1876_s12  }
  0x71   : > { %s1262_s6 = sadd.s32 4294967294, %s1870_s17   ;;  %s40_s22 = sadd.s32 1, %s1858_s14 }
  0x72   : > { %s43_s5 = sadd.s32 1, %s1862_s15  ;;  %p41_p1 = scmp.ge.s32.totalorder %s40_s22, 2 }
  0x73   : > { %s47_s11 = sadd.s32 1, %s1866_s16  ;;  %s56_s19 = sadd.s32 1, %s1842_s10 }
  0x74   : > { %p63_p3 = scmp.ne.s32.totalorder %s1842_s10, %s1838_s9  ;;  %s2531_s22 = smov (%p41_p1, %s40_s22), 0 }
  0x75   : > { %2477 = sst [smem:[#allocation26_spill]] %s2531_s22  ;;  %s2533_s5 = smov (!%p41_p1, %s43_s5), %s1862_s15 }
  0x76   : > { %p2455_p5 = scmp.eq.s32.totalorder %s1870_s17, 0  ;;  %p69_p7 = scmp.ne.s32.totalorder %s1838_s9, %s1834_s30 }
  0x77   : > { %p45_p11 = scmp.ge.s32.totalorder %s2533_s5, 2  ;;  %s80_s26 = ssub.s32 %s1858_s14, %s2531_s22 }
  0x78   : > { %p2125_p12 = por %p2455_p5, %p63_p3  ;;  %p2479_p13 = scmp.eq.s32.totalorder %s2002_s18, 0 }
  0x79   : > { %s2535_s5 = smov (%p45_p11, %s2533_s5), 0  ;;  %s2537_s11 = smov (!%p45_p11, %s47_s11), %s1866_s16 }
  0x7a   : > { %p2134_p0 = por %p2479_p13, %p69_p7  ;;  %2481 = sst [smem:[#allocation27_spill]] %s2535_s5 }
  0x7b   : > { %s52_s13 = ssub.s32 %s1862_s15, %s2535_s5  ;;  %p249_p2 = scmp.eq.s32.totalorder %s2002_s18, 7 }
  0x7c   : > { %p49_p4 = scmp.ge.s32.totalorder %s2537_s11, 2  ;;  %p255_p6 = scmp.eq.s32.totalorder %s1262_s6, 7 }
  0x7d   : > { %p2147_p8 = por %p249_p2, %p63_p3  ;;  %p2454_p9 = scmp.lt.s32.totalorder %s1870_s17, 8 }
  0x7e   : > { %s2539_s11 = smov (%p49_p4, %s2537_s11), 0  ;;  %p2157_p10 = por %p255_p6, %p69_p7 }
  0x7f   : > { %s2482_s20 = scalar_select %p2147_p8, 1, 0 }
  0x80   : > { %s2484_s23 = scalar_select %p2157_p10, 1, 0 }
  0x81   : > { %2483 = sst [smem:[#allocation28_spill]] %s2482_s20  ;;  %s323_s25 = sand.u32 1, %s1842_s10  }
  0x82   : > { %2485 = sst [smem:[#allocation29_spill]] %s2484_s23  ;;  %s51_s7 = ssub.s32 %s1866_s16, %s2539_s11 }
  0x83   : > { %s53_s21 = sor.u32 %s52_s13, %s51_s7  ;;  %s2164_s24 = sor.u32 %s80_s26, %s51_s7 }
  0x84   : > { %p54_p1 = scmp.eq.s32.totalorder %s53_s21, 0  ;;  %s1268_s1 = sshll.u32 %s323_s25, 3 }
  0x85   : > { %s1269_s6 = sshll.u32 %s1866_s16, 1  ;;  %s327_s5 = scalar_lea.vmem [#allocation6], %s1268_s1 }
  0x86   : > { %s2169_s2 = scalar_select %p54_p1, %s1842_s10, %s56_s19  }
  0x87   : > { %s332_s3 = sadd.s32 %s1862_s15, %s1269_s6  ;;  %s336_s22 = sshll.u32 %s327_s5, 4  ;;  %s2177_s22 = int_to_ptr.vmem [resolvable:$true] %s336_s22 }
  0x88   : > { %s1270_s4 = sshll.u32 %s332_s3, 7  ;;  %p2183_p7 = pnand %p2454_p9, %p2125_p12 }
  0x89   : > { %s2175_s20 = scalar_lea.hbm %s2434_s0, %s1270_s4  ;;  %s2188_s3 = sadd.s32 %s1858_s14, %s1269_s6 }
  0x8a   : > { %s324_s5 = scalar_lea.sflag [#allocation7], %s323_s25  ;;  %s1660_s30 = scalar_lea.hbm %s2175_s20, 128 }
  0x8b   : > { %p1661_p11 = scmp.ne.s32.totalorder %s2175_s20, %s1660_s30  ;;  %p1662_p13 = pneg %p2183_p7 }
  0x8c   : > { %s1665_s8 = scalar_lea.hbm %s2434_s0, 512  ;;  %p1666_p12 = scmp.lt.u32.totalorder %s2175_s20, %s2434_s0 }
  0x8d   : > { %p1663_p2 = pnand %p1662_p13, %p1661_p11  ;;  %p1667_p6 = scmp.lt.u32.totalorder %s1665_s8, %s1660_s30 }
  0x8e   : > { %p1669_p9 = scmp.lt.u32.totalorder %s1660_s30, %s2175_s20 }
  0x8f   : > { %p1664_p4 = pneg %p1663_p2  ;;  %p1668_p1 = por %p1667_p6, %p1666_p12 }
  0x91   : > { %p1670_p5 = por %p1669_p9, %p1668_p1 }
  0x93   : > { %p1671_p3 = pnand %p1670_p5, %p1664_p4 }
  0x95   : > { %1674 = shalt.err (!%p1671_p3)
}
  0x96   : > { %s1675_s25 = scalar_lea.vmem %s2177_s22, 128  ;;  %s1877_s7 = smov [#allocation6]  }
  0x97   : > { %p1676_p11 = scmp.ne.s32.totalorder %s2177_s22, %s1675_s25  ;;  %s1680_s21 = sshll.u32 %s1877_s7, 4  ;;  %s1681_s21 = int_to_ptr.vmem [resolvable:$false] %s1680_s21 }
  0x98   : > { %s1682_s1 = scalar_lea.vmem %s1681_s21, 256  ;;  %p1683_p8 = scmp.lt.s32.totalorder %s2177_s22, %s1681_s21 }
  0x99   : > { %p1678_p2 = pnand %p1676_p11, %p1662_p13  ;;  %p1684_p12 = scmp.lt.s32.totalorder %s1682_s1, %s1675_s25 }
  0x9b   : > { %p1679_p10 = pneg %p1678_p2  ;;  %p1685_p6 = por %p1684_p12, %p1683_p8 }
  0x9d   : > { %p1686_p9 = pnand %p1685_p6, %p1679_p10 }
  0x9f   : > { %1689 = shalt.err (!%p1686_p9)
}
  0xa0   : > { %1425 = dma.hbm_to_vmem [thread:$0]  (!%p2183_p7), %s2175_s20, 128, %s2177_s22, %s324_s5  }
  0xa1   : > { %s84_s6 = sadd.s32 1, %s1830_s29  ;;  %p2487_p5 = scmp.eq.s32.totalorder %s2164_s24, 0 }
  0xa2   : > { %p91_p8 = scmp.ne.s32.totalorder %s1830_s29, %s1826_s28  ;;  %p97_p10 = scmp.ne.s32.totalorder %s1826_s28, %s1822_s27 }
  0xa3   : > { %s2219_s30 = scalar_select %p2487_p5, %s1830_s29, %s84_s6  }
  0xa4   : > { %s343_s19 = sand.u32 1, %s1870_s17   ;;  %s345_s4 = sand.u32 1, %s1830_s29  }
  0xa5   : > { %p2488_p3 = scmp.eq.s32.totalorder %s1870_s17, 0  ;;  %p2489_p4 = scmp.eq.s32.totalorder %s2002_s18, 0 }
  0xa6   : > { %s1271_s8 = sshll.u32 %s345_s4, 3  ;;  %s1273_s13 = sshll.u32 %s2188_s3, 7 }
  0xa7   : > { %p93_p13 = por %p91_p8, %p2488_p3  ;;  %p2231_p1 = por %p97_p10, %p2489_p4 }
  0xa8   : > { %s2491_s22 = sld [smem:[#allocation30_spill]]  ;;  %s347_s27 = scalar_lea.vmem [#allocation9], %s1271_s8 }
  0xa9   : > { %s2490_s26 = scalar_select %p2231_p1, 1, 0 }
  0xaa   : > { %s356_s24 = sshll.u32 %s347_s27, 4  ;;  %p2492_p7 = scmp.lt.s32.totalorder %s1870_s17, 8  ;;  %s2241_s24 = int_to_ptr.vmem [resolvable:$true] %s356_s24 }
  0xab   : > { %s344_s3 = scalar_lea.sflag [#allocation10], %s343_s19 }
  0xac   : > { %p2245_p11 = pnand %p2492_p7, %p93_p13 }
  0xae   : > { %s2239_s20 = scalar_lea.hbm %s2491_s22, %s1273_s13  ;;  %p1692_p12 = pneg %p2245_p11 }
  0xaf   : > { %s1690_s7 = scalar_lea.hbm %s2239_s20, 128  ;;  %s1695_s6 = scalar_lea.hbm %s2491_s22, 512 }
  0xb0   : > { %p1691_p2 = scmp.ne.s32.totalorder %s2239_s20, %s1690_s7  ;;  %p1696_p5 = scmp.lt.u32.totalorder %s2239_s20, %s2491_s22 }
  0xb1   : > { %p1697_p8 = scmp.lt.u32.totalorder %s1695_s6, %s1690_s7  ;;  %p1699_p3 = scmp.lt.u32.totalorder %s1690_s7, %s2239_s20 }
  0xb2   : > { %p1693_p6 = pnand %p1692_p12, %p1691_p2 }
  0xb3   : > { %p1698_p10 = por %p1697_p8, %p1696_p5 }
  0xb4   : > { %p1694_p9 = pneg %p1693_p6 }
  0xb5   : > { %p1700_p13 = por %p1699_p3, %p1698_p10 }
  0xb7   : > { %p1701_p4 = pnand %p1700_p13, %p1694_p9 }
  0xb9   : > { %1704 = shalt.err (!%p1701_p4)
}
  0xba   : > { %s1705_s19 = scalar_lea.vmem %s2241_s24, 128  ;;  %s1878_s13 = smov [#allocation9]  }
  0xbb   : > { %p1706_p7 = scmp.ne.s32.totalorder %s2241_s24, %s1705_s19  ;;  %s1710_s23 = sshll.u32 %s1878_s13, 4  ;;  %s1711_s23 = int_to_ptr.vmem [resolvable:$false] %s1710_s23 }
  0xbc   : > { %s1712_s25 = scalar_lea.vmem %s1711_s23, 256  ;;  %p1713_p1 = scmp.lt.s32.totalorder %s2241_s24, %s1711_s23 }
  0xbd   : > { %p1708_p2 = pnand %p1706_p7, %p1692_p12  ;;  %p1714_p5 = scmp.lt.s32.totalorder %s1712_s25, %s1705_s19 }
  0xbf   : > { %p1709_p6 = pneg %p1708_p2  ;;  %p1715_p8 = por %p1714_p5, %p1713_p1 }
  0xc1   : > { %p1716_p10 = pnand %p1715_p8, %p1709_p6 }
  0xc3   : > { %1719 = shalt.err (!%p1716_p10)
}
  0xc4   : > { %1428 = dma.hbm_to_vmem [thread:$0]  (!%p2245_p11), %s2239_s20, 128, %s2241_s24, %s344_s3  }
  0xc5   : > { %s2494_s27 = sld [smem:[#allocation25_spill]] }
  0xcb   : > { %p2495_p9 = scmp.ne.s32.totalorder %s2494_s27, 0 }
  0xcc   : > { %s2277_s7 = sand.u32 (!%p2495_p9), 1, %s1838_s9  }
  0xcd   : > { %365 = sbr.rel (%p2495_p9) target bundleno = 1739 (0x6cb), region = 52  ;;  %s1275_s21 = sshll.u32 (!%p2495_p9), %s2277_s7, 3 }
  0xce   : > { %s368_s1 = scalar_lea.sflag (!%p2495_p9), [#allocation7], %s2277_s7  ;;  %s2281_s6 = scalar_lea.vmem (!%p2495_p9), [#allocation6], %s1275_s21 }
  0xd4   : > { %1801 = dma.done.wait (%p2134_p0), %s368_s1, 128  }
  0xd5   : > { %1803 = vsyncadd (%p2134_p0), %s368_s1, 4294967168  ;;  %s376_s20 = sand.u32 1, %s2002_s18   ;;  %s378_s24 = sand.u32 1, %s1826_s28  }
  0xd6   : > { %s2289_s5 = sshll.u32 %s378_s24, 3  ;;  %s377_s3 = scalar_lea.sflag [#allocation10], %s376_s20 }
  0xd7   : > { %s380_s4 = scalar_lea.vmem [#allocation9], %s2289_s5  ;;  %p2496_p1 = scmp.ne.s32.totalorder %s2490_s26, 0 }
  0xd9   : > { %1805 = dma.done.wait (%p2496_p1), %s377_s3, 128  }
  0xda   : > { %1807 = vsyncadd (%p2496_p1), %s377_s3, 4294967168  ;;  %p2497_p11 = scmp.eq.s32.totalorder %s2002_s18, 0 }
  0xdc   : > { %1809 = dma.done.wait (%p2497_p11), [#allocation10], 512   ;;  %p2498_p0 = pmov %p2497_p11 }
  0xde   : > { %1811 = vsyncadd (%p2498_p0), [#allocation10], 4294966784  ;;  %p2499_p12 = pmov %p2498_p0 }
  0xdf   : > { %p2500_p3 = pmov %p2498_p0 }
  0xe0   : > { %1813 = dma.done.wait (%p2499_p12), [#allocation13], 1024  }
  0xe1   : > { %1815 = vsyncadd (%p2500_p3), [#allocation13], 4294966272  ;;  %s2304_s12 = scalar_lea.vmem [#allocation15], %s1275_s21  ;;  %s2501_s8 = sld [smem:[#allocation22_spill]] }
  0xe7   : > { %p1281_p13 = scmp.ne.s32.totalorder %s2501_s8, 0 }
  0xe8   : > { %v435_v0 = vld [vmem:[#allocation11] sm:$0xff] (!%p1281_p13)  ;;  %v436_v1 = vld [vmem:[#allocation11 + $0x8] sm:$0xff] (!%p1281_p13)  ;;  %v437_v2 = vld [vmem:[#allocation11 + $0x10] sm:$0xff] (!%p1281_p13)  ;;  %v1879_v3 = vmov (!%p1281_p13), 0.0|0.0   ;;  %vm1880_vm0 = vmmov (!%p1281_p13), 0   ;;  %v1881_v6 = vmov (!%p1281_p13), 0.0  }
  0xe9   : > { %433 = sbr.rel (%p1281_p13) target bundleno = 457 (0x1c9), region = 76  ;;  %1376 = vmatprep.subr.bf16.mxu0 (!%p1281_p13), %v1879_v3  ;;  %v1377_v4 = vpack.c.bf16 (!%p1281_p13), %v436_v1, %v435_v0  ;;  %v438_v5 = vld [vmem:[#allocation11 + $0x18] sm:$0xff] (!%p1281_p13)  ;;  %1331 = vmatprep.mubr.msk.f32.mxu0 (!%p1281_p13), %vm1880_vm0, %v1881_v6  ;;  %vm521_vm1 = vcmask (!%p1281_p13), 7168   ;;  %vm526_vm2 = vcmask (!%p1281_p13), 130048   ;;  %v1882_v7 = vmov (!%p1281_p13), -inf   ;;  %v434_v9 = vld [vmem:[%s2281_s6] sm:$0xff] (!%p1281_p13) }
  0xea   : > { %522 = vst.msk [vmem:[#allocation3] sm:$0xff] (!%p1281_p13), %vm521_vm1, %v1882_v7  ;;  %523 = vst.msk [vmem:[#allocation3 + $0x8] sm:$0xff] (!%p1281_p13), %vm521_vm1, %v1882_v7  ;;  %v1380_v8 = vpack.c.bf16 (!%p1281_p13), %v438_v5, %v437_v2  ;;  %vm446_vm3 = vcmask (!%p1281_p13), 261120   ;;  %s2502_s19 = sld [smem:[#allocation34_spill]] (!%p1281_p13) }
  0xeb   : > { %524 = vst.msk [vmem:[#allocation4] sm:$0xff] (!%p1281_p13), %vm521_vm1, %v1881_v6  ;;  %525 = vst.msk [vmem:[#allocation4 + $0x8] sm:$0xff] (!%p1281_p13), %vm521_vm1, %v1881_v6  ;;  %1378 = vmatpush3.bf16.msra.mxu0 (!%p1281_p13), %v1377_v4 }
  0xec   : > { %527 = vst.msk [vmem:[#allocation5] sm:$0xff] (!%p1281_p13), %vm526_vm2, %v1881_v6  ;;  %528 = vst.msk [vmem:[#allocation5 + $0x8] sm:$0xff] (!%p1281_p13), %vm526_vm2, %v1881_v6  ;;  %1379 = vmatprep.subr.bf16.mxu0 (!%p1281_p13), %v1879_v3 }
  0xef   : > { %1381 = vmatpush3.bf16.msra.mxu0 (!%p1281_p13), %v1380_v8 }
  0xf0   : > { %v1282_v10 = vld [vmem:[%s2502_s19] ss:$0 sm:$0xff] }
  0xf2   : > { %1332 = vmatmul.mubr.msk.f32.vlgmr.msra.gmra.mrb[0].mxu0 %vm446_vm3, %v434_v9 }
 0x1c5   : > { %v516_v11 = vpop.f32.mrb[0].mxu0 }
 0x1c6   : > { %v517_v12 = vadd.f32 %v1282_v10, %v516_v11  ;;  %v1333_v13 = vpop.f32.mrb[1].mxu0 }
 0x1c8   : > { %520 = vst.msk [vmem:[#allocation2] sm:$0xff] %vm446_vm3, %v517_v12 }
 0x1c9 PF: > { %v530_v14 = vld [vmem:[#allocation12] sm:$0xff]  ;;  %v531_v15 = vld [vmem:[#allocation12 + $0x8] sm:$0xff]  ;;  %v532_v16 = vld [vmem:[#allocation12 + $0x10] sm:$0xff]  ;;  %v1883_v17 = vmov 0.0|0.0   ;;  %vm1884_vm4 = vmmov 0   ;;  %v1885_v20 = vmov 0.0  }
 0x1ca   : > { %1382 = vmatprep.subr.bf16.mxu0 %v1883_v17  ;;  %v1383_v18 = vpack.c.bf16 %v531_v15, %v530_v14  ;;  %v533_v19 = vld [vmem:[#allocation12 + $0x18] sm:$0xff]  ;;  %1342 = vmatprep.mubr.msk.f32.mxu0 %vm1884_vm4, %v1885_v20  ;;  %vm541_vm5 = vcmask 261120   ;;  %s2503_s25 = sld [smem:[#allocation35_spill]]  ;;  %vm697_vm6 = vcmask 130048   ;;  %s1886_s27 = smov 112   ;;  %v615_v28 = vld [vmem:[#allocation14] sm:$0xff] }
 0x1cb   : > { %1388 = vmatprep.subr.bf16.mxu1 %v1883_v17  ;;  %1353 = vmatprep.mubr.msk.f32.mxu1 %vm1884_vm4, %v1885_v20  ;;  %v1386_v21 = vpack.c.bf16 %v533_v19, %v532_v16  ;;  %v529_v22 = vld [vmem:[%s380_s4] sm:$0xff]  ;;  %v616_v29 = vld [vmem:[#allocation14 + $0x8] sm:$0xff]  ;;  %vm775_vm7 = vcmask 64512   ;;  %v1887_v39 = vmov 0   ;;  %s2504_s6 = sld [smem:[#allocation36_spill]]  ;;  %vm797_vm8 = vcmask 7168  }
 0x1cc   : > { %1384 = vmatpush3.bf16.msra.mxu0 %v1383_v18  ;;  %v617_v30 = vld [vmem:[#allocation14 + $0x10] sm:$0xff]  ;;  %v1389_v31 = vpack.c.bf16 %v616_v29, %v615_v28  ;;  %v618_v32 = vld [vmem:[#allocation14 + $0x18] sm:$0xff]  ;;  %1561 = vset.pattern.permute.xlu0 %v1887_v39  ;;  %v791_v6 = vld [vmem:[#allocation4] sm:$0xff]  ;;  %s2505_s20 = sld [smem:[#allocation22_spill]] }
 0x1cd   : > { %1385 = vmatprep.subr.bf16.mxu0 %v1883_v17  ;;  %v1392_v33 = vpack.c.bf16 %v618_v32, %v617_v30  ;;  %1562 = vset.pattern.permute.xlu1 %v1887_v39  ;;  %v774_v47 = vld [vmem:[#allocation3] sm:$0xff]  ;;  %v961_v52 = vld [vmem:[#allocation3 + $0x8] sm:$0xff]  ;;  %v978_v16 = vld [vmem:[#allocation4 + $0x8] sm:$0xff] }
 0x1ce   : > { %1390 = vmatpush3.bf16.msra.mxu1 %v1389_v31  ;;  %v799_v10 = vld [vmem:[#allocation5] sm:$0xff] }
 0x1cf   : > { %v696_v27 = vld [vmem:[#allocation2] sm:$0xff]  ;;  %1391 = vmatprep.subr.bf16.mxu1 %v1883_v17 }
 0x1d0   : > { %1387 = vmatpush3.bf16.msra.mxu0 %v1386_v21  ;;  %v1284_v23 = vld [vmem:[%s2503_s25] ss:$0 sm:$0xff] }
 0x1d1   : > { %1356 = vmatprep.subr.mxu0 %v1885_v20  ;;  %v1286_v40 = vld [vmem:[%s2504_s6] ss:$0 sm:$0xff] }
 0x1d2   : > { %1393 = vmatpush3.bf16.msra.mxu1 %v1392_v33  ;;  %p1294_p4 = scmp.ne.s32.totalorder %s2505_s20, 1 }
 0x1d3   : > { %1343 = vmatmul.mubr.msk.f32.vlgmr.msra.gmra.mrb[0].mxu0 %vm541_vm5, %v529_v22  ;;  %1361 = vmatprep.subr.mxu1 %v1885_v20  ;;  %v1888_v28 = vmov (!%p1294_p4), 0   ;;  %s1889_s24 = smov (!%p1294_p4), 16  }
 0x1d4   : > { %1358 = vmatprep.mubr.msk.f32.mxu0 %vm1884_vm4, %v1885_v20 }
 0x1d5   : > { %1354 = vmatmul.mubr.msk.f32.vlgmr.msra.gmra.mrb[0].mxu1 %vm541_vm5, %v529_v22 }
 0x1d6   : > { %1363 = vmatprep.mubr.msk.f32.mxu1 %vm1884_vm4, %v1885_v20 }
 0x2a6   : > { %v611_v24 = vpop.f32.mrb[0].mxu0 }
 0x2a7   : > { %v612_v25 = vadd.f32 %v1284_v23, %v611_v24  ;;  %v1344_v26 = vpop.f32.mrb[1].mxu0 }
 0x2a8   : > { %v692_v41 = vpop.f32.mrb[0].mxu1 }
 0x2a9   : > { %884 = vrot.lane.b32.xlu0 %v612_v25, %s1886_s27  ;;  %1357 = vmatpush3.xpose.msk.msra.mxu0 %vm697_vm6, %v612_v25  ;;  %v693_v42 = vadd.f32 %v1286_v40, %v692_v41  ;;  %v1355_v43 = vpop.f32.mrb[1].mxu1 }
 0x2aa   : > { %1366 = vmatprep.subr.mxu0 %v1885_v20 }
 0x2ab   : > { %1362 = vmatpush3.msra.mxu1 %v693_v42 }
 0x2ac   : > { %1359 = vmatmul.mubr.msk.f32.vlgmr.msra.gmra.mrb[2].mxu0 %vm697_vm6, %v696_v27  ;;  %1371 = vmatprep.subr.mxu1 %v1885_v20 }
 0x2ad   : > { %882 = vrot.lane.b32.xlu0 %v696_v27, %s1886_s27  ;;  %1368 = vmatprep.mubr.msk.f32.mxu0 %vm1884_vm4, %v1885_v20 }
 0x31b   : > { %v885_v34 = vpop.permute.xlu0 %884 }
 0x31c   : > { %1367 = vmatpush3.xpose.msk.msra.mxu0 %vm697_vm6, %v885_v34 }
 0x31f   : > { %v883_v35 = vpop.permute.xlu0 %882 }
 0x320   : > { %1369 = vmatmul.mubr.msk.f32.vlgmr.msra.gmra.mrb[4].mxu0 %vm697_vm6, %v883_v35 }
 0x37f   : > { %v770_v36 = vpop.f32.mrb[2].mxu0 }
 0x380   : > { %v776_v37 = vsel %vm775_vm7, %v770_v36, -inf  ;;  %v1360_v38 = vpop.f32.mrb[3].mxu0 }
 0x381   : > { %777 = vmax.xlane.f32.xlu1 %v776_v37 }
 0x3f3   : > { %v956_v44 = vpop.f32.mrb[4].mxu0 }
 0x3f4   : > { %v1370_v45 = vpop.f32.mrb[5].mxu0  ;;  %v962_v46 = vsel %vm775_vm7, %v956_v44, -inf }
 0x3f5   : > { %963 = vmax.xlane.f32.xlu1 %v962_v46 }
 0x40e   : > { %v778_v48 = vpop.xlane.xlu1 %777 }
 0x40f   : > { %v779_v49 = vmax.f32 %v774_v47, %v778_v48 }
 0x411   : > { %v780_v50 = vsub.f32 %v774_v47, %v779_v49  ;;  %881 = vst.msk [vmem:[#allocation3] sm:$0xff] %vm797_vm8, %v779_v49  ;;  %785 = vperm.xlu0 %1561, %v779_v49  }
 0x413   : > { %v781_v51 = vmul.f32 1.442695, %v780_v50 }
 0x415   : > { %994 = vrot.lane.b32.xlu0 %v693_v42, %s1886_s27  ;;  %1563 = vpow2.f32 %v781_v51 }
 0x41f   : > { %v1564_v55 = vpop.eup %1563 }
 0x420   : > { %v792_v7 = vmul.f32 %v1564_v55, %v791_v6 }
 0x482   : > { %v964_v53 = vpop.xlane.xlu1 %963 }
 0x483   : > { %v965_v54 = vmax.f32 %v961_v52, %v964_v53 }
 0x485   : > { %1072 = vst.msk [vmem:[#allocation3 + $0x8] sm:$0xff] %vm797_vm8, %v965_v54  ;;  %971 = vperm.xlu1 %1562, %v965_v54   ;;  %v966_v62 = vsub.f32 %v961_v52, %v965_v54 }
 0x487   : > { %v967_v63 = vmul.f32 1.442695, %v966_v62 }
 0x489   : > { %802 = vperm.xlu1 %1562, %v1564_v55  }
 0x490   : > { %v786_v56 = vpop.permute.xlu0 %785 }
 0x491   : > { %v788_v57 = vsub.f32 %v770_v36, %v786_v56 }
 0x493   : > { %v789_v58 = vmul.f32 1.442695, %v788_v57 }
 0x494   : > { %v995_v59 = vpop.permute.xlu0 %994 }
 0x495   : > { %1565 = vpow2.f32 %v789_v58 }
 0x496   : > { %1567 = vpow2.f32 %v967_v63 }
 0x49f   : > { %v1566_v60 = vpop.eup %1565 }
 0x4a0   : > { %1364 = vmatmul.mubr.msk.f32.vlgmr.msra.gmra.mrb[2].mxu1 %vm775_vm7, %v1566_v60  ;;  %v793_v61 = vsel %vm775_vm7, %v1566_v60, 0.0  ;;  %v1568_v0 = vpop.eup %1567 }
 0x4a1   : > { %794 = vadd.xlane.f32.xlu0 %v793_v61  ;;  %1372 = vmatpush3.msra.mxu1 %v995_v59  ;;  %v979_v17 = vmul.f32 %v1568_v0, %v978_v16 }
 0x4a2   : > { %1373 = vmatprep.mubr.msk.f32.mxu1 %vm1884_vm4, %v1885_v20  ;;  %v986_v20 = vld [vmem:[#allocation5 + $0x8] sm:$0xff] }
 0x4b7   : > { %989 = vperm.xlu0 %1561, %v1568_v0  }
 0x4bb   : > { %1571 = vset.pattern.permute.xlu0 (!%p1294_p4), %v1888_v28 }
 0x504   : > { %v972_v1 = vpop.permute.xlu1 %971 }
 0x505   : > { %v974_v2 = vsub.f32 %v956_v44, %v972_v1 }
 0x507   : > { %v975_v3 = vmul.f32 1.442695, %v974_v2 }
 0x508   : > { %v803_v11 = vpop.permute.xlu1 %802 }
 0x509   : > { %1569 = vpow2.f32 %v975_v3  ;;  %v805_v12 = vmul.f32 %v803_v11, %v799_v10 }
 0x513   : > { %v1570_v4 = vpop.eup %1569 }
 0x514   : > { %1374 = vmatmul.mubr.msk.f32.vlgmr.msra.gmra.mrb[4].mxu1 %vm775_vm7, %v1570_v4  ;;  %v980_v5 = vsel %vm775_vm7, %v1570_v4, 0.0 }
 0x515   : > { %981 = vadd.xlane.f32.xlu1 %v980_v5 }
 0x52e   : > { %v795_v8 = vpop.xlane.xlu0 %794 }
 0x52f   : > { %v796_v9 = vadd.f32 %v795_v8, %v792_v7 }
 0x531   : > { %798 = vst.msk [vmem:[#allocation4] sm:$0xff] %vm797_vm8, %v796_v9 }
 0x536   : > { %v990_v21 = vpop.permute.xlu0 %989 }
 0x537   : > { %v992_v22 = vmul.f32 %v990_v21, %v986_v20 }
 0x538   : > { %v1078_v27 = vld [vmem:[#allocation4] sm:$0xff] (!%p1294_p4) }
 0x573   : > { %v875_v13 = vpop.f32.mrb[2].mxu1 }
 0x574   : > { %v879_v14 = vadd.f32 %v875_v13, %v805_v12  ;;  %v1365_v15 = vpop.f32.mrb[3].mxu1 }
 0x576   : > { %880 = vst.msk [vmem:[#allocation5] sm:$0xff] %vm697_vm6, %v879_v14 }
 0x57d   : > { %v1077_v35 = vld [vmem:[#allocation5] sm:$0xff] (!%p1294_p4) }
 0x5a2   : > { %v982_v18 = vpop.xlane.xlu1 %981 }
 0x5a3   : > { %v983_v19 = vadd.f32 %v982_v18, %v979_v17 }
 0x5a5   : > { %984 = vst.msk [vmem:[#allocation4 + $0x8] sm:$0xff] %vm797_vm8, %v983_v19 }
 0x5ac   : > { %v1087_v26 = vld [vmem:[#allocation4 + $0x8] sm:$0xff] (!%p1294_p4) }
 0x5ad   : > { %1572 = vrcp.f32 (!%p1294_p4), %v1087_v26 }
 0x5ae   : > { %1574 = vrcp.f32 (!%p1294_p4), %v1078_v27 }
 0x5b7   : > { %v1573_v29 = vpop.eup (!%p1294_p4), %1572 }
 0x5b8   : > { %1091 = vperm.xlu0 (!%p1294_p4), %1571, %v1573_v29   ;;  %v1575_v30 = vpop.eup (!%p1294_p4), %1574 }
 0x5bc   : > { %1082 = vperm.xlu0 (!%p1294_p4), %1571, %v1575_v30  }
 0x5e4   : > { %1076 = sbr.rel (%p1294_p4) target bundleno = 1711 (0x6af), region = 80 }
 0x5e7   : > { %v1066_v23 = vpop.f32.mrb[4].mxu1 }
 0x5e8   : > { %v1070_v24 = vadd.f32 %v1066_v23, %v992_v22  ;;  %v1375_v25 = vpop.f32.mrb[5].mxu1 }
 0x5ea   : > { %1071 = vst.msk [vmem:[#allocation5 + $0x8] sm:$0xff] %vm697_vm6, %v1070_v24 }
 0x5f1   : > { %v1086_v31 = vld [vmem:[#allocation5 + $0x8] sm:$0xff] }
 0x637   : > { %v1092_v32 = vpop.permute.xlu0 %1091 }
 0x638   : > { %v1094_v33 = vmul.f32 %v1092_v32, %v1086_v31 }
 0x63a   : > { %1096 = vrot.lane.b32.xlu1 %v1094_v33, %s1889_s24 }
 0x63b   : > { %v1083_v34 = vpop.permute.xlu0 %1082 }
 0x63c   : > { %v1085_v36 = vmul.f32 %v1083_v34, %v1077_v35 }
 0x6ac   : > { %v1097_v37 = vpop.permute.xlu1 %1096 }
 0x6ad   : > { %v1099_v38 = vsel %vm697_vm6, %v1085_v36, %v1097_v37 }
 0x6ae   : > { %1100 = vst.msk [vmem:[%s2304_s12] sm:$0xff] %vm541_vm5, %v1099_v38 }
 0x6af PF: > { %s2506_s5 = sld [smem:[#allocation24_spill]]  ;;  %s2507_s3 = sld [smem:[#allocation23_spill]] }
 0x6b0   : > { %s2508_s4 = sld [smem:[#allocation28_spill]]  ;;  %s1117_s26 = sshll.u32 %s2304_s12, 4  ;;  %s2363_s26 = int_to_ptr.vmem [resolvable:$true] %s1117_s26 }
 0x6b1   : > { %s2509_s25 = sld [smem:[#allocation37_spill]]  ;;  %s1102_s21 = scalar_lea.sflag [#allocation8], %s2277_s7 }
 0x6b2   : > { %s1720_s1 = scalar_lea.vmem %s2363_s26, 128  ;;  %s1890_s6 = smov [#allocation15]  }
 0x6b3   : > { %p1721_p7 = scmp.ne.s32.totalorder %s2363_s26, %s1720_s1  ;;  %s1724_s20 = sshll.u32 %s1890_s6, 4  ;;  %s1725_s20 = int_to_ptr.vmem [resolvable:$false] %s1724_s20 }
 0x6b4   : > { %s1726_s12 = scalar_lea.vmem %s1725_s20, 256  ;;  %p1727_p8 = scmp.lt.s32.totalorder %s2363_s26, %s1725_s20 }
 0x6b5   : > { %s1296_s8 = sshll.u32 %s2506_s5, 1  ;;  %p1728_p10 = scmp.lt.s32.totalorder %s1726_s12, %s1720_s1 }
 0x6b6   : > { %s1113_s18 = sadd.s32 %s2507_s3, %s1296_s8  ;;  %p2510_p2 = scmp.ne.s32.totalorder %s2508_s4, 0 }
 0x6b7   : > { %s1297_s19 = sshll.u32 %s1113_s18, 7  ;;  %p1729_p9 = por %p1728_p10, %p1727_p8 }
 0x6b8   : > { %s1115_s27 = scalar_lea.hbm %s2509_s25, %s1297_s19  ;;  %p1722_p6 = pnand %p1721_p7, %p2510_p2 }
 0x6ba   : > { %p1723_p5 = pneg %p1722_p6 }
 0x6bc   : > { %p1730_p1 = pnand %p1729_p9, %p1723_p5 }
 0x6be   : > { %1733 = shalt.err (!%p1730_p1)
}
 0x6bf   : > { %s1734_s24 = scalar_lea.hbm %s1115_s27, 128  ;;  %s1738_s3 = scalar_lea.hbm %s2509_s25, 512 }
 0x6c0   : > { %p1735_p11 = scmp.ne.s32.totalorder %s1115_s27, %s1734_s24  ;;  %p1739_p3 = scmp.lt.u32.totalorder %s1115_s27, %s2509_s25 }
 0x6c1   : > { %p1740_p13 = scmp.lt.u32.totalorder %s1738_s3, %s1734_s24  ;;  %p1742_p7 = scmp.lt.u32.totalorder %s1734_s24, %s1115_s27 }
 0x6c2   : > { %p1736_p0 = pnand %p1735_p11, %p2510_p2 }
 0x6c3   : > { %p1741_p4 = por %p1740_p13, %p1739_p3 }
 0x6c4   : > { %p1737_p12 = pneg %p1736_p0 }
 0x6c5   : > { %p1743_p6 = por %p1742_p7, %p1741_p4 }
 0x6c7   : > { %p1744_p5 = pnand %p1743_p6, %p1737_p12 }
 0x6c9   : > { %1747 = shalt.err (!%p1744_p5)
}
 0x6ca   : > { %1410 = dma.vmem_to_hbm [thread:$0]  (%p2510_p2), %s2363_s26, 128, %s1115_s27, %s1102_s21  }
 0x6cb PF: > { %s2511_s19 = sld [smem:[#allocation21_spill]]  ;;  %s2512_s13 = sld [smem:[#allocation29_spill]] }
 0x6cc   : > { %p1440_p8 = scmp.ge.s32.totalorder %s1870_s17, 2 }
 0x6d1   : > { %s1129_s23 = sand.u32 1, %s2511_s19   ;;  %p2513_p10 = scmp.ne.s32.totalorder %s2512_s13, 0 }
 0x6d2   : > { %s1130_s1 = scalar_lea.sflag [#allocation8], %s1129_s23 }
 0x6d3   : > { %p1430_p9 = pnand %p1440_p8, %p2513_p10 }
 0x6d5   : > { %1817 = dma.done.wait (!%p1430_p9), %s1130_s1, 128  }
 0x6d6   : > { %1819 = vsyncadd (!%p1430_p9), %s1130_s1, 4294967168  ;;  %s28_s17 = sadd.s32 1, %s1870_s17   ;;  %s2515_s4 = sld [smem:[#allocation26_spill]] }
 0x6d7   : > { %p2390_p1 = scmp.ge.s32.totalorder %s28_s17, 10   ;;  %s2516_s26 = sld [smem:[#allocation27_spill]] }
 0x6d8   : > { %s2517_s21 = smov %s2539_s11  ;;  %s2518_s27 = smov %s1826_s28 }
 0x6d9   : > { %s2519_s28 = smov %s1830_s29  ;;  %s2520_s29 = smov %s2219_s30 }
 0x6da   : > { %s2521_s30 = smov %s1838_s9  ;;  %s2522_s9 = smov %s1842_s10 }
 0x6db   : > { %s2523_s10 = smov %s2169_s2  ;;  %s2524_s11 = smov %s1858_s14 }
 0x6dc   : > { %s2525_s12 = smov %s1862_s15  ;;  %s2526_s13 = smov %s1866_s16 }
 0x6dd   : > { %s2527_s14 = smov %s2515_s4  ;;  %s2528_s15 = smov %s2516_s26 }
 0x6de   : > { %s2529_s16 = smov %s2517_s21  ;;  %27 = sbr.rel (!%p2390_p1) target bundleno = 22 (0x16), region = 133 }
 0x6e5   :  { %1135 = vsyncpa [#allocation7], 1 }
 0x6e6   :  { %1137 = vsyncpa [#allocation7 + $0x1], 1 }
 0x6e7   :  { %1138 = vsyncpa [#allocation10], 1 }
 0x6e8   :  { %1140 = vsyncpa [#allocation10 + $0x1], 1 }
 0x6e9   :  { %1141 = vsyncpa [#allocation13], 1 }
 0x6ea   :  { %1142 = vsyncpa [#allocation8], 1 }
 0x6eb   :  { %1144 = vsyncpa [#allocation8 + $0x1], 1 }

</bundles_post_ra>
